<compile_context>
chip_gen: v6e
topology: v6e:2x2x1
jax: 0.10.0
libtpu: 0.0.40
codegen_flags: <defaults>
</compile_context>

<pallas_src>
import jax
import jax.numpy as jnp
from jax.experimental import pallas as pl
from jax.experimental.pallas import tpu as pltpu

EPS = 1e-5  # torch.nn.LayerNorm default


def _layernorm(x, gamma, beta):
    # x: (T, D) f32, gamma/beta: (1, D); biased variance like torch LayerNorm
    mean = jnp.mean(x, axis=-1, keepdims=True)
    var = jnp.mean((x - mean) ** 2, axis=-1, keepdims=True)
    return (x - mean) * jax.lax.rsqrt(var + EPS) * gamma + beta


def prenorm_xattn_kernel(x_ref, ctx_ref,
                         gx_ref, bx_ref, gc_ref, bc_ref,
                         wq_ref, wk_ref, wv_ref, wo_ref, bo_ref,
                         o_ref,
                         q_sc, m_sc, l_sc, acc_sc):
    k_step = pl.program_id(1)

    Bt, N, D = x_ref.shape
    _, Mt, Dc = ctx_ref.shape
    Din = wq_ref.shape[1]

    # --- init (once per batch tile): LayerNorm(x), Q projection, accumulators ---
    @pl.when(k_step == 0)
    def _init():
        x = x_ref[...].reshape(Bt * N, D).astype(jnp.float32)
        xn = _layernorm(x, gx_ref[...], bx_ref[...])
        # softmax scale already folded into Wq in the wrapper; bf16 MXU operands
        q = jnp.dot(xn.astype(jnp.bfloat16), wq_ref[...],
                    preferred_element_type=jnp.float32)            # (Bt*N, Din)
        q_sc[...] = q.reshape(Bt, N, Din)
        m_sc[...] = jnp.full(m_sc.shape, -jnp.inf, jnp.float32)
        l_sc[...] = jnp.zeros(l_sc.shape, jnp.float32)
        acc_sc[...] = jnp.zeros(acc_sc.shape, jnp.float32)

    # --- per context tile: LayerNorm(context), K/V projections (separate dots;
    #     Din may not be 128-aligned, so a fused-KV lane split would relayout) ---
    ctx = ctx_ref[...].reshape(Bt * Mt, Dc).astype(jnp.float32)
    cn = _layernorm(ctx, gc_ref[...], bc_ref[...]).astype(jnp.bfloat16)
    k3 = jnp.dot(cn, wk_ref[...],
                 preferred_element_type=jnp.float32).reshape(Bt, Mt, Din)
    v3 = jnp.dot(cn, wv_ref[...],
                 preferred_element_type=jnp.float32).reshape(Bt, Mt, Din)

    # --- online softmax (flash pattern), batched QK^T with no explicit transpose ---
    s = jnp.einsum("bnd,bmd->bnm",
                   q_sc[...].astype(jnp.bfloat16), k3.astype(jnp.bfloat16),
                   preferred_element_type=jnp.float32)             # (Bt, N, Mt)
    m_new = jnp.maximum(m_sc[...], jnp.max(s, axis=-1, keepdims=True))
    alpha = jnp.exp(m_sc[...] - m_new)
    p = jnp.exp(s - m_new)
    l_sc[...] = alpha * l_sc[...] + jnp.sum(p, axis=-1, keepdims=True)
    acc_sc[...] = alpha * acc_sc[...] + jnp.einsum(
        "bnm,bmd->bnd", p.astype(jnp.bfloat16), v3.astype(jnp.bfloat16),
        preferred_element_type=jnp.float32)                        # (Bt, N, Din)
    m_sc[...] = m_new

    # --- finalize: normalize, output projection, store true-width output ---
    @pl.when(k_step == pl.num_programs(1) - 1)
    def _finalize():
        inv_l = pl.reciprocal(l_sc[...], approx=True)
        attn = (acc_sc[...] * inv_l).astype(jnp.bfloat16).reshape(Bt * N, Din)
        out = jnp.dot(attn, wo_ref[...],
                      preferred_element_type=jnp.float32) + bo_ref[...]
        o_ref[...] = out.reshape(Bt, N, D).astype(o_ref.dtype)


def _round_up(v, m):
    return ((v + m - 1) // m) * m


def _vmem_capacity_bytes():
    try:
        return int(pltpu.get_tpu_info().vmem_capacity_bytes)
    except Exception:
        return 64 * 2 ** 20  # conservative (v7x per-TC capacity)


def _estimate_vmem(block_b, n, d, m_blk, dc, din, in_bytes, out_bytes):
    rows_x = block_b * n
    rows_c = block_b * m_blk
    x_blk = 2 * rows_x * d * in_bytes          # double-buffered x block
    ctx_blk = 2 * rows_c * dc * in_bytes       # double-buffered context block
    out_blk = 2 * rows_x * d * out_bytes       # double-buffered output block
    weights = (d * din + 2 * dc * din + din * d) * 2        # bf16 weights (single-buffered)
    weights += (2 * d + 2 * dc + d) * 4                     # LN params + bias (f32)
    scratch = 2 * rows_x * din * 4 + 2 * rows_x * 4         # q, acc, m, l
    temps = (rows_c * dc * 4                                 # cn (f32)
             + 2 * rows_c * din * 2                          # k3, v3 (bf16)
             + 2 * rows_x * m_blk * 4)                       # s, p (f32)
    return x_blk + ctx_blk + out_blk + weights + scratch + 2 * temps


def _pick_block_m(M, cap=512):
    cap = max(8, min(M, cap))
    for cand in range(cap, 7, -1):
        if M % cand == 0 and cand % 8 == 0:
            return cand
    return M


def _pick_block_b(B, n, d, m_blk, dc, din, budget, in_bytes, out_bytes):
    # require >=2 grid steps along the batch axis so v7x megacore can shard it
    grid_min = 2 if B >= 2 else 1
    for cand in range(B, 0, -1):
        if B % cand:
            continue
        if B // cand < grid_min:
            continue
        if cand * max(n, m_blk) > 2048:  # row cap (raised from 512 per review)
            continue
        if _estimate_vmem(cand, n, d, m_blk, dc, din, in_bytes, out_bytes) > budget:
            continue
        return cand
    return 1


def _build_call(B, N, D, M, Dc, Din, block_b, block_m, out_dtype, vmem_limit,
                weight_buffer_count):
    if weight_buffer_count is None:
        def const_spec(shape):
            return pl.BlockSpec(shape, lambda b, k: (0,) * len(shape))
    else:
        pm = pl.Buffered(weight_buffer_count)
        def const_spec(shape):
            return pl.BlockSpec(shape, lambda b, k: (0,) * len(shape),
                                pipeline_mode=pm)

    return pl.pallas_call(
        prenorm_xattn_kernel,
        out_shape=jax.ShapeDtypeStruct((B, N, D), out_dtype),
        grid_spec=pltpu.PrefetchScalarGridSpec(
            num_scalar_prefetch=0,
            grid=(B // block_b, M // block_m),           # reduction (M) axis last
            in_specs=[
                pl.BlockSpec((block_b, N, D), lambda b, k: (b, 0, 0)),        # x (resident over k)
                pl.BlockSpec((block_b, block_m, Dc), lambda b, k: (b, k, 0)),  # context tile
                const_spec((1, D)),        # gamma_x
                const_spec((1, D)),        # beta_x
                const_spec((1, Dc)),       # gamma_ctx
                const_spec((1, Dc)),       # beta_ctx
                const_spec((D, Din)),      # Wq (bf16, softmax scale folded)
                const_spec((Dc, Din)),     # Wk (bf16)
                const_spec((Dc, Din)),     # Wv (bf16)
                const_spec((Din, D)),      # Wo (bf16)
                const_spec((1, D)),        # bo (f32)
            ],
            out_specs=pl.BlockSpec((block_b, N, D), lambda b, k: (b, 0, 0)),
            scratch_shapes=[
                pltpu.VMEM((block_b, N, Din), jnp.float32),  # q
                pltpu.VMEM((block_b, N, 1), jnp.float32),    # m (online-softmax max)
                pltpu.VMEM((block_b, N, 1), jnp.float32),    # l (online-softmax denom)
                pltpu.VMEM((block_b, N, Din), jnp.float32),  # acc
            ]),
        compiler_params=pltpu.CompilerParams(
            dimension_semantics=("parallel", "arbitrary"),
            vmem_limit_bytes=vmem_limit),
    )


def prenorm_cross_attention(x, context, params, *, block_b=None, block_m=None):
    B, N, D = x.shape
    Bc, M, Dc = context.shape
    assert Bc == B
    Din = params["wq"].shape[1]
    # TODO(synk): for context lengths that are not a multiple of 8, pad M in the
    # wrapper and mask the padded keys (additive -inf on s) in the online softmax.
    assert M % 8 == 0, "context length must be a multiple of 8"

    # Keep the (Bt,N,D)->(Bt*N,D) fold reshape tile-aligned.
    N_pad = _round_up(max(N, 8), 8)
    x_in = x if N_pad == N else jnp.pad(x, ((0, 0), (0, N_pad - N), (0, 0)))

    # Weight prep (would be precomputed once in a real module):
    #   bf16 MXU operands, softmax scale folded into Wq, K/V kept separate.
    wq = (params["wq"] * (Din ** -0.5)).astype(jnp.bfloat16)
    wk = params["wk"].astype(jnp.bfloat16)
    wv = params["wv"].astype(jnp.bfloat16)
    wo = params["wo"].astype(jnp.bfloat16)
    bo = params["bo"].astype(jnp.float32)

    # Generation-aware VMEM budget (64 MiB/TC on v7x, 128 MiB on v5e/v6e).
    cap = _vmem_capacity_bytes()
    vmem_limit = min(int(cap * 0.80), 112 * 2 ** 20)
    budget = int(vmem_limit * 0.9)

    if block_m is None:
        block_m = _pick_block_m(M)
    assert M % block_m == 0 and block_m % 8 == 0

    itemsize = jnp.dtype(x.dtype).itemsize
    if block_b is None:
        block_b = _pick_block_b(B, N_pad, D, block_m, Dc, Din, budget,
                                itemsize, itemsize)
    assert B % block_b == 0

    args = (x_in, context,
            params["gx"].astype(jnp.float32), params["bx"].astype(jnp.float32),
            params["gc"].astype(jnp.float32), params["bc"].astype(jnp.float32),
            wq, wk, wv, wo, bo)

    try:
        out = _build_call(B, N_pad, D, M, Dc, Din, block_b, block_m,
                          x.dtype, vmem_limit, weight_buffer_count=1)(*args)
    except Exception:
        # Buffered(1) unsupported on this jax build -> default double buffering.
        out = _build_call(B, N_pad, D, M, Dc, Din, block_b, block_m,
                          x.dtype, vmem_limit, weight_buffer_count=None)(*args)

    return out if N_pad == N else out[:, :N, :]


def prenorm_cross_attention_ref(x, context, params):
    """Pure-JAX reference matching the PyTorch forward semantics."""
    def ln(t, g, b):
        mean = jnp.mean(t, axis=-1, keepdims=True)
        var = jnp.mean((t - mean) ** 2, axis=-1, keepdims=True)
        return (t - mean) * jax.lax.rsqrt(var + EPS) * g + b

    xn = ln(x, params["gx"][0], params["bx"][0])
    cn = ln(context, params["gc"][0], params["bc"][0])
    q = jnp.einsum("bnd,de->bne", xn, params["wq"])
    k = jnp.einsum("bmd,de->bme", cn, params["wk"])
    v = jnp.einsum("bmd,de->bme", cn, params["wv"])
    s = jnp.einsum("bne,bme->bnm", q, k) * (q.shape[-1] ** -0.5)
    p = jax.nn.softmax(s, axis=-1)
    attn = jnp.einsum("bnm,bme->bne", p, v)
    return jnp.einsum("bne,ed->bnd", attn, params["wo"]) + params["bo"][0]


if __name__ == "__main__":
    B, N, D = 2, 8, 32        # batch, latent tokens, dim
    M, Dc = 16, 16            # context tokens, context_dim
    Din = 32                  # inner attention dim (single head)

    key = jax.random.PRNGKey(0)
    kx, kc, kq, kk, kv, ko = jax.random.split(key, 6)

    x = jax.random.normal(kx, (B, N, D), dtype=jnp.float32)
    context = jax.random.normal(kc, (B, M, Dc), dtype=jnp.float32)

    params = {
        # LayerNorm params (torch init: weight=1, bias=0)
        "gx": jnp.ones((1, D), jnp.float32),
        "bx": jnp.zeros((1, D), jnp.float32),
        "gc": jnp.ones((1, Dc), jnp.float32),
        "bc": jnp.zeros((1, Dc), jnp.float32),
        # fn (cross-attention) weights, deterministic init
        "wq": 0.05 * jax.random.normal(kq, (D, Din), jnp.float32),
        "wk": 0.05 * jax.random.normal(kk, (Dc, Din), jnp.float32),
        "wv": 0.05 * jax.random.normal(kv, (Dc, Din), jnp.float32),
        "wo": 0.05 * jax.random.normal(ko, (Din, D), jnp.float32),
        "bo": jnp.zeros((1, D), jnp.float32),
    }

    out = prenorm_cross_attention(x, context, params)
    out = jax.block_until_ready(out)

    ref = prenorm_cross_attention_ref(x, context, params)
    assert out.shape == (B, N, D)
    # bf16 MXU operands + approx reciprocal -> slightly looser tolerance than f32
    assert jnp.allclose(out, ref, atol=2e-2, rtol=2e-2), "mismatch vs reference"

    print("KERNEL_OK")
</pallas_src>

<mosaic_0001>
module attributes {stable_mosaic.version = 11 : i64} {
  func.func @prenorm_xattn_kernel(%arg0: i32, %arg1: i32, %arg2: memref<1x8x32xf32, #tpu.memory_space<vmem>>, %arg3: memref<1x16x16xf32, #tpu.memory_space<vmem>>, %arg4: memref<1x32xf32, #tpu.memory_space<vmem>>, %arg5: memref<1x32xf32, #tpu.memory_space<vmem>>, %arg6: memref<1x16xf32, #tpu.memory_space<vmem>>, %arg7: memref<1x16xf32, #tpu.memory_space<vmem>>, %arg8: memref<32x32xbf16, #tpu.memory_space<vmem>>, %arg9: memref<16x32xbf16, #tpu.memory_space<vmem>>, %arg10: memref<16x32xbf16, #tpu.memory_space<vmem>>, %arg11: memref<32x32xbf16, #tpu.memory_space<vmem>>, %arg12: memref<1x32xf32, #tpu.memory_space<vmem>>, %arg13: memref<1x8x32xf32, #tpu.memory_space<vmem>>, %arg14: memref<1x8x32xf32, #tpu.memory_space<vmem>>, %arg15: memref<1x8x1xf32, #tpu.memory_space<vmem>>, %arg16: memref<1x8x1xf32, #tpu.memory_space<vmem>>, %arg17: memref<1x8x32xf32, #tpu.memory_space<vmem>>) attributes {dimension_semantics = [#tpu.dimension_semantics<parallel>, #tpu.dimension_semantics<arbitrary>], iteration_bounds = array<i64: 2, 1>, scalar_prefetch = 0 : i64, scratch_operands = 4 : i64, tpu.core_type = #tpu.core_type<tc>, window_params = [{transform_indices = @transform_0, window_bounds = array<i64: 1, 8, 32>}, {transform_indices = @transform_1, window_bounds = array<i64: 1, 16, 16>}, {pipeline_mode = #tpu.pipeline_mode<synchronous>, transform_indices = @transform_2, window_bounds = array<i64: 1, 32>}, {pipeline_mode = #tpu.pipeline_mode<synchronous>, transform_indices = @transform_3, window_bounds = array<i64: 1, 32>}, {pipeline_mode = #tpu.pipeline_mode<synchronous>, transform_indices = @transform_4, window_bounds = array<i64: 1, 16>}, {pipeline_mode = #tpu.pipeline_mode<synchronous>, transform_indices = @transform_5, window_bounds = array<i64: 1, 16>}, {pipeline_mode = #tpu.pipeline_mode<synchronous>, transform_indices = @transform_6, window_bounds = array<i64: 32, 32>}, {pipeline_mode = #tpu.pipeline_mode<synchronous>, transform_indices = @transform_7, window_bounds = array<i64: 16, 32>}, {pipeline_mode = #tpu.pipeline_mode<synchronous>, transform_indices = @transform_8, window_bounds = array<i64: 16, 32>}, {pipeline_mode = #tpu.pipeline_mode<synchronous>, transform_indices = @transform_9, window_bounds = array<i64: 32, 32>}, {pipeline_mode = #tpu.pipeline_mode<synchronous>, transform_indices = @transform_10, window_bounds = array<i64: 1, 32>}, {transform_indices = @transform_11, window_bounds = array<i64: 1, 8, 32>}]} {
    %c0_i32 = arith.constant 0 : i32
    %0 = arith.cmpi eq, %arg1, %c0_i32 : i32
    %1 = arith.extui %0 : i1 to i32
    %c0_i32_0 = arith.constant 0 : i32
    %2 = arith.cmpi ne, %1, %c0_i32_0 : i32
    scf.if %2 {
      %c0_47 = arith.constant 0 : index
      %c0_48 = arith.constant 0 : index
      %c0_49 = arith.constant 0 : index
      %68 = vector.load %arg2[%c0_47, %c0_48, %c0_49] : memref<1x8x32xf32, #tpu.memory_space<vmem>>, vector<1x8x32xf32>
      %69 = vector.shape_cast %68 : vector<1x8x32xf32> to vector<8x32xf32>
      %c0_50 = arith.constant 0 : index
      %c0_51 = arith.constant 0 : index
      %70 = vector.load %arg4[%c0_50, %c0_51] : memref<1x32xf32, #tpu.memory_space<vmem>>, vector<1x32xf32>
      %c0_52 = arith.constant 0 : index
      %c0_53 = arith.constant 0 : index
      %71 = vector.load %arg5[%c0_52, %c0_53] : memref<1x32xf32, #tpu.memory_space<vmem>>, vector<1x32xf32>
      %cst_54 = arith.constant dense<0.000000e+00> : vector<8xf32>
      %72 = vector.multi_reduction <add>, %69, %cst_54 [1] : vector<8x32xf32> to vector<8xf32>
      %73 = vector.shape_cast %72 : vector<8xf32> to vector<8x1xf32>
      %cst_55 = arith.constant 3.200000e+01 : f32
      %74 = vector.broadcast %cst_55 : f32 to vector<8x1xf32>
      %75 = arith.divf %73, %74 : vector<8x1xf32>
      %76 = vector.broadcast %75 : vector<8x1xf32> to vector<8x32xf32>
      %77 = arith.subf %69, %76 : vector<8x32xf32>
      %78 = arith.mulf %77, %77 : vector<8x32xf32>
      %cst_56 = arith.constant dense<0.000000e+00> : vector<8xf32>
      %79 = vector.multi_reduction <add>, %78, %cst_56 [1] : vector<8x32xf32> to vector<8xf32>
      %80 = vector.shape_cast %79 : vector<8xf32> to vector<8x1xf32>
      %cst_57 = arith.constant 3.200000e+01 : f32
      %81 = vector.broadcast %cst_57 : f32 to vector<8x1xf32>
      %82 = arith.divf %80, %81 : vector<8x1xf32>
      %83 = vector.broadcast %75 : vector<8x1xf32> to vector<8x32xf32>
      %84 = arith.subf %69, %83 : vector<8x32xf32>
      %cst_58 = arith.constant 9.99999974E-6 : f32
      %85 = vector.broadcast %cst_58 : f32 to vector<8x1xf32>
      %86 = arith.addf %82, %85 : vector<8x1xf32>
      %87 = math.rsqrt %86 : vector<8x1xf32>
      %88 = vector.broadcast %87 : vector<8x1xf32> to vector<8x32xf32>
      %89 = arith.mulf %84, %88 : vector<8x32xf32>
      %90 = vector.broadcast %70 : vector<1x32xf32> to vector<8x32xf32>
      %91 = arith.mulf %89, %90 : vector<8x32xf32>
      %92 = vector.broadcast %71 : vector<1x32xf32> to vector<8x32xf32>
      %93 = arith.addf %91, %92 : vector<8x32xf32>
      %94 = arith.truncf %93 : vector<8x32xf32> to vector<8x32xbf16>
      %c0_59 = arith.constant 0 : index
      %c0_60 = arith.constant 0 : index
      %95 = vector.load %arg8[%c0_59, %c0_60] : memref<32x32xbf16, #tpu.memory_space<vmem>>, vector<32x32xbf16>
      %cst_61 = arith.constant dense<0.000000e+00> : vector<8x32xf32>
      %96 = tpu.matmul %94, %95, %cst_61 {dimension_numbers = #tpu.dot_dimension_numbers<[1], [0], [0], [1], [0, 0, 1, 1], [], []>} : vector<8x32xbf16>, vector<32x32xbf16>, vector<8x32xf32> -> vector<8x32xf32>
      %97 = vector.shape_cast %96 : vector<8x32xf32> to vector<1x8x32xf32>
      %c0_62 = arith.constant 0 : index
      %c0_63 = arith.constant 0 : index
      %c0_64 = arith.constant 0 : index
      %98 = vector.load %arg14[%c0_62, %c0_63, %c0_64] : memref<1x8x32xf32, #tpu.memory_space<vmem>>, vector<1x8x32xf32>
      tpu.vector_store %arg14[%c0_62, %c0_63, %c0_64], %97 {strides = array<i32>} : memref<1x8x32xf32, #tpu.memory_space<vmem>>, vector<1x8x32xf32>,
      %cst_65 = arith.constant 0xFF800000 : f32
      %99 = vector.broadcast %cst_65 : f32 to vector<1x8x1xf32>
      %c0_66 = arith.constant 0 : index
      %c0_67 = arith.constant 0 : index
      %c0_68 = arith.constant 0 : index
      %100 = vector.load %arg15[%c0_66, %c0_67, %c0_68] : memref<1x8x1xf32, #tpu.memory_space<vmem>>, vector<1x8x1xf32>
      tpu.vector_store %arg15[%c0_66, %c0_67, %c0_68], %99 {strides = array<i32>} : memref<1x8x1xf32, #tpu.memory_space<vmem>>, vector<1x8x1xf32>,
      %cst_69 = arith.constant 0.000000e+00 : f32
      %101 = vector.broadcast %cst_69 : f32 to vector<1x8x1xf32>
      %c0_70 = arith.constant 0 : index
      %c0_71 = arith.constant 0 : index
      %c0_72 = arith.constant 0 : index
      %102 = vector.load %arg16[%c0_70, %c0_71, %c0_72] : memref<1x8x1xf32, #tpu.memory_space<vmem>>, vector<1x8x1xf32>
      tpu.vector_store %arg16[%c0_70, %c0_71, %c0_72], %101 {strides = array<i32>} : memref<1x8x1xf32, #tpu.memory_space<vmem>>, vector<1x8x1xf32>,
      %cst_73 = arith.constant 0.000000e+00 : f32
      %103 = vector.broadcast %cst_73 : f32 to vector<1x8x32xf32>
      %c0_74 = arith.constant 0 : index
      %c0_75 = arith.constant 0 : index
      %c0_76 = arith.constant 0 : index
      %104 = vector.load %arg17[%c0_74, %c0_75, %c0_76] : memref<1x8x32xf32, #tpu.memory_space<vmem>>, vector<1x8x32xf32>
      tpu.vector_store %arg17[%c0_74, %c0_75, %c0_76], %103 {strides = array<i32>} : memref<1x8x32xf32, #tpu.memory_space<vmem>>, vector<1x8x32xf32>,
    } else {
    }
    %c0 = arith.constant 0 : index
    %c0_1 = arith.constant 0 : index
    %c0_2 = arith.constant 0 : index
    %3 = vector.load %arg3[%c0, %c0_1, %c0_2] : memref<1x16x16xf32, #tpu.memory_space<vmem>>, vector<1x16x16xf32>
    %4 = vector.shape_cast %3 : vector<1x16x16xf32> to vector<16x16xf32>
    %c0_3 = arith.constant 0 : index
    %c0_4 = arith.constant 0 : index
    %5 = vector.load %arg6[%c0_3, %c0_4] : memref<1x16xf32, #tpu.memory_space<vmem>>, vector<1x16xf32>
    %c0_5 = arith.constant 0 : index
    %c0_6 = arith.constant 0 : index
    %6 = vector.load %arg7[%c0_5, %c0_6] : memref<1x16xf32, #tpu.memory_space<vmem>>, vector<1x16xf32>
    %cst = arith.constant dense<0.000000e+00> : vector<16xf32>
    %7 = vector.multi_reduction <add>, %4, %cst [1] : vector<16x16xf32> to vector<16xf32>
    %8 = vector.shape_cast %7 : vector<16xf32> to vector<16x1xf32>
    %cst_7 = arith.constant 1.600000e+01 : f32
    %9 = vector.broadcast %cst_7 : f32 to vector<16x1xf32>
    %10 = arith.divf %8, %9 : vector<16x1xf32>
    %11 = vector.broadcast %10 : vector<16x1xf32> to vector<16x16xf32>
    %12 = arith.subf %4, %11 : vector<16x16xf32>
    %13 = arith.mulf %12, %12 : vector<16x16xf32>
    %cst_8 = arith.constant dense<0.000000e+00> : vector<16xf32>
    %14 = vector.multi_reduction <add>, %13, %cst_8 [1] : vector<16x16xf32> to vector<16xf32>
    %15 = vector.shape_cast %14 : vector<16xf32> to vector<16x1xf32>
    %cst_9 = arith.constant 1.600000e+01 : f32
    %16 = vector.broadcast %cst_9 : f32 to vector<16x1xf32>
    %17 = arith.divf %15, %16 : vector<16x1xf32>
    %18 = vector.broadcast %10 : vector<16x1xf32> to vector<16x16xf32>
    %19 = arith.subf %4, %18 : vector<16x16xf32>
    %cst_10 = arith.constant 9.99999974E-6 : f32
    %20 = vector.broadcast %cst_10 : f32 to vector<16x1xf32>
    %21 = arith.addf %17, %20 : vector<16x1xf32>
    %22 = math.rsqrt %21 : vector<16x1xf32>
    %23 = vector.broadcast %22 : vector<16x1xf32> to vector<16x16xf32>
    %24 = arith.mulf %19, %23 : vector<16x16xf32>
    %25 = vector.broadcast %5 : vector<1x16xf32> to vector<16x16xf32>
    %26 = arith.mulf %24, %25 : vector<16x16xf32>
    %27 = vector.broadcast %6 : vector<1x16xf32> to vector<16x16xf32>
    %28 = arith.addf %26, %27 : vector<16x16xf32>
    %29 = arith.truncf %28 : vector<16x16xf32> to vector<16x16xbf16>
    %c0_11 = arith.constant 0 : index
    %c0_12 = arith.constant 0 : index
    %30 = vector.load %arg9[%c0_11, %c0_12] : memref<16x32xbf16, #tpu.memory_space<vmem>>, vector<16x32xbf16>
    %cst_13 = arith.constant dense<0.000000e+00> : vector<16x32xf32>
    %31 = tpu.matmul %29, %30, %cst_13 {dimension_numbers = #tpu.dot_dimension_numbers<[1], [0], [0], [1], [0, 0, 1, 1], [], []>} : vector<16x16xbf16>, vector<16x32xbf16>, vector<16x32xf32> -> vector<16x32xf32>
    %32 = vector.shape_cast %31 : vector<16x32xf32> to vector<1x16x32xf32>
    %c0_14 = arith.constant 0 : index
    %c0_15 = arith.constant 0 : index
    %33 = vector.load %arg10[%c0_14, %c0_15] : memref<16x32xbf16, #tpu.memory_space<vmem>>, vector<16x32xbf16>
    %cst_16 = arith.constant dense<0.000000e+00> : vector<16x32xf32>
    %34 = tpu.matmul %29, %33, %cst_16 {dimension_numbers = #tpu.dot_dimension_numbers<[1], [0], [0], [1], [0, 0, 1, 1], [], []>} : vector<16x16xbf16>, vector<16x32xbf16>, vector<16x32xf32> -> vector<16x32xf32>
    %35 = vector.shape_cast %34 : vector<16x32xf32> to vector<1x16x32xf32>
    %c0_17 = arith.constant 0 : index
    %c0_18 = arith.constant 0 : index
    %c0_19 = arith.constant 0 : index
    %36 = vector.load %arg14[%c0_17, %c0_18, %c0_19] : memref<1x8x32xf32, #tpu.memory_space<vmem>>, vector<1x8x32xf32>
    %37 = arith.truncf %36 : vector<1x8x32xf32> to vector<1x8x32xbf16>
    %38 = arith.truncf %32 : vector<1x16x32xf32> to vector<1x16x32xbf16>
    "tpu.trace_start"() <{level = 10 : i32, message = "bnd,bmd->bnm"}> : () -> ()
    %cst_20 = arith.constant dense<0.000000e+00> : vector<1x8x16xf32>
    %39 = tpu.matmul %37, %38, %cst_20 {dimension_numbers = #tpu.dot_dimension_numbers<[2], [2], [1], [1], [0, 0, 0, 1, 1, 1], [0], [0]>} : vector<1x8x32xbf16>, vector<1x16x32xbf16>, vector<1x8x16xf32> -> vector<1x8x16xf32>
    "tpu.trace_stop"() : () -> ()
    %c0_21 = arith.constant 0 : index
    %c0_22 = arith.constant 0 : index
    %c0_23 = arith.constant 0 : index
    %40 = vector.load %arg15[%c0_21, %c0_22, %c0_23] : memref<1x8x1xf32, #tpu.memory_space<vmem>>, vector<1x8x1xf32>
    %cst_24 = arith.constant dense<0xFF800000> : vector<1x8xf32>
    %41 = vector.multi_reduction <maximumf>, %39, %cst_24 [2] : vector<1x8x16xf32> to vector<1x8xf32>
    %42 = vector.shape_cast %41 : vector<1x8xf32> to vector<1x8x1xf32>
    %43 = arith.maximumf %40, %42 : vector<1x8x1xf32>
    %c0_25 = arith.constant 0 : index
    %c0_26 = arith.constant 0 : index
    %c0_27 = arith.constant 0 : index
    %44 = vector.load %arg15[%c0_25, %c0_26, %c0_27] : memref<1x8x1xf32, #tpu.memory_space<vmem>>, vector<1x8x1xf32>
    %45 = arith.subf %44, %43 : vector<1x8x1xf32>
    %46 = math.exp %45 : vector<1x8x1xf32>
    %47 = vector.broadcast %43 : vector<1x8x1xf32> to vector<1x8x16xf32>
    %48 = arith.subf %39, %47 : vector<1x8x16xf32>
    %49 = math.exp %48 : vector<1x8x16xf32>
    %c0_28 = arith.constant 0 : index
    %c0_29 = arith.constant 0 : index
    %c0_30 = arith.constant 0 : index
    %50 = vector.load %arg16[%c0_28, %c0_29, %c0_30] : memref<1x8x1xf32, #tpu.memory_space<vmem>>, vector<1x8x1xf32>
    %51 = arith.mulf %46, %50 : vector<1x8x1xf32>
    %cst_31 = arith.constant dense<0.000000e+00> : vector<1x8xf32>
    %52 = vector.multi_reduction <add>, %49, %cst_31 [2] : vector<1x8x16xf32> to vector<1x8xf32>
    %53 = vector.shape_cast %52 : vector<1x8xf32> to vector<1x8x1xf32>
    %54 = arith.addf %51, %53 : vector<1x8x1xf32>
    %c0_32 = arith.constant 0 : index
    %c0_33 = arith.constant 0 : index
    %c0_34 = arith.constant 0 : index
    %55 = vector.load %arg16[%c0_32, %c0_33, %c0_34] : memref<1x8x1xf32, #tpu.memory_space<vmem>>, vector<1x8x1xf32>
    tpu.vector_store %arg16[%c0_32, %c0_33, %c0_34], %54 {strides = array<i32>} : memref<1x8x1xf32, #tpu.memory_space<vmem>>, vector<1x8x1xf32>,
    %c0_35 = arith.constant 0 : index
    %c0_36 = arith.constant 0 : index
    %c0_37 = arith.constant 0 : index
    %56 = vector.load %arg17[%c0_35, %c0_36, %c0_37] : memref<1x8x32xf32, #tpu.memory_space<vmem>>, vector<1x8x32xf32>
    %57 = vector.broadcast %46 : vector<1x8x1xf32> to vector<1x8x32xf32>
    %58 = arith.mulf %57, %56 : vector<1x8x32xf32>
    %59 = arith.truncf %49 : vector<1x8x16xf32> to vector<1x8x16xbf16>
    %60 = arith.truncf %35 : vector<1x16x32xf32> to vector<1x16x32xbf16>
    "tpu.trace_start"() <{level = 10 : i32, message = "bnm,bmd->bnd"}> : () -> ()
    %cst_38 = arith.constant dense<0.000000e+00> : vector<1x8x32xf32>
    %61 = tpu.matmul %59, %60, %cst_38 {dimension_numbers = #tpu.dot_dimension_numbers<[2], [1], [1], [2], [0, 0, 0, 1, 1, 2], [0], [0]>} : vector<1x8x16xbf16>, vector<1x16x32xbf16>, vector<1x8x32xf32> -> vector<1x8x32xf32>
    "tpu.trace_stop"() : () -> ()
    %62 = arith.addf %58, %61 : vector<1x8x32xf32>
    %c0_39 = arith.constant 0 : index
    %c0_40 = arith.constant 0 : index
    %c0_41 = arith.constant 0 : index
    %63 = vector.load %arg17[%c0_39, %c0_40, %c0_41] : memref<1x8x32xf32, #tpu.memory_space<vmem>>, vector<1x8x32xf32>
    tpu.vector_store %arg17[%c0_39, %c0_40, %c0_41], %62 {strides = array<i32>} : memref<1x8x32xf32, #tpu.memory_space<vmem>>, vector<1x8x32xf32>,
    %c0_42 = arith.constant 0 : index
    %c0_43 = arith.constant 0 : index
    %c0_44 = arith.constant 0 : index
    %64 = vector.load %arg15[%c0_42, %c0_43, %c0_44] : memref<1x8x1xf32, #tpu.memory_space<vmem>>, vector<1x8x1xf32>
    tpu.vector_store %arg15[%c0_42, %c0_43, %c0_44], %43 {strides = array<i32>} : memref<1x8x1xf32, #tpu.memory_space<vmem>>, vector<1x8x1xf32>,
    %c0_i32_45 = arith.constant 0 : i32
    %65 = arith.cmpi eq, %arg1, %c0_i32_45 : i32
    %66 = arith.extui %65 : i1 to i32
    %c0_i32_46 = arith.constant 0 : i32
    %67 = arith.cmpi ne, %66, %c0_i32_46 : i32
    scf.if %67 {
      %c0_47 = arith.constant 0 : index
      %c0_48 = arith.constant 0 : index
      %c0_49 = arith.constant 0 : index
      %68 = vector.load %arg16[%c0_47, %c0_48, %c0_49] : memref<1x8x1xf32, #tpu.memory_space<vmem>>, vector<1x8x1xf32>
      %69 = tpu.reciprocal %68 {approx = true} : vector<1x8x1xf32> -> vector<1x8x1xf32>
      %c0_50 = arith.constant 0 : index
      %c0_51 = arith.constant 0 : index
      %c0_52 = arith.constant 0 : index
      %70 = vector.load %arg17[%c0_50, %c0_51, %c0_52] : memref<1x8x32xf32, #tpu.memory_space<vmem>>, vector<1x8x32xf32>
      %71 = vector.broadcast %69 : vector<1x8x1xf32> to vector<1x8x32xf32>
      %72 = arith.mulf %70, %71 : vector<1x8x32xf32>
      %73 = arith.truncf %72 : vector<1x8x32xf32> to vector<1x8x32xbf16>
      %74 = vector.shape_cast %73 : vector<1x8x32xbf16> to vector<8x32xbf16>
      %c0_53 = arith.constant 0 : index
      %c0_54 = arith.constant 0 : index
      %75 = vector.load %arg11[%c0_53, %c0_54] : memref<32x32xbf16, #tpu.memory_space<vmem>>, vector<32x32xbf16>
      %cst_55 = arith.constant dense<0.000000e+00> : vector<8x32xf32>
      %76 = tpu.matmul %74, %75, %cst_55 {dimension_numbers = #tpu.dot_dimension_numbers<[1], [0], [0], [1], [0, 0, 1, 1], [], []>} : vector<8x32xbf16>, vector<32x32xbf16>, vector<8x32xf32> -> vector<8x32xf32>
      %c0_56 = arith.constant 0 : index
      %c0_57 = arith.constant 0 : index
      %77 = vector.load %arg12[%c0_56, %c0_57] : memref<1x32xf32, #tpu.memory_space<vmem>>, vector<1x32xf32>
      %78 = vector.broadcast %77 : vector<1x32xf32> to vector<8x32xf32>
      %79 = arith.addf %76, %78 : vector<8x32xf32>
      %80 = vector.shape_cast %79 : vector<8x32xf32> to vector<1x8x32xf32>
      %c0_58 = arith.constant 0 : index
      %c0_59 = arith.constant 0 : index
      %c0_60 = arith.constant 0 : index
      %81 = vector.load %arg13[%c0_58, %c0_59, %c0_60] : memref<1x8x32xf32, #tpu.memory_space<vmem>>, vector<1x8x32xf32>
      tpu.vector_store %arg13[%c0_58, %c0_59, %c0_60], %80 {strides = array<i32>} : memref<1x8x32xf32, #tpu.memory_space<vmem>>, vector<1x8x32xf32>,
    } else {
    }
    return
  }
  func.func @transform_0(%arg0: i32, %arg1: i32) -> (i32, i32, i32) {
    %c0_i32 = arith.constant 0 : i32
    %c0_i32_0 = arith.constant 0 : i32
    %c0_i32_1 = arith.constant 0 : i32
    return %arg0, %c0_i32, %c0_i32_0 : i32, i32, i32
  }
  func.func @transform_1(%arg0: i32, %arg1: i32) -> (i32, i32, i32) {
    %c0_i32 = arith.constant 0 : i32
    %c0_i32_0 = arith.constant 0 : i32
    return %arg0, %arg1, %c0_i32 : i32, i32, i32
  }
  func.func @transform_2(%arg0: i32, %arg1: i32) -> (i32, i32) {
    %c0_i32 = arith.constant 0 : i32
    %c0_i32_0 = arith.constant 0 : i32
    %c0_i32_1 = arith.constant 0 : i32
    return %c0_i32, %c0_i32_0 : i32, i32
  }
  func.func @transform_3(%arg0: i32, %arg1: i32) -> (i32, i32) {
    %c0_i32 = arith.constant 0 : i32
    %c0_i32_0 = arith.constant 0 : i32
    %c0_i32_1 = arith.constant 0 : i32
    return %c0_i32, %c0_i32_0 : i32, i32
  }
  func.func @transform_4(%arg0: i32, %arg1: i32) -> (i32, i32) {
    %c0_i32 = arith.constant 0 : i32
    %c0_i32_0 = arith.constant 0 : i32
    %c0_i32_1 = arith.constant 0 : i32
    return %c0_i32, %c0_i32_0 : i32, i32
  }
  func.func @transform_5(%arg0: i32, %arg1: i32) -> (i32, i32) {
    %c0_i32 = arith.constant 0 : i32
    %c0_i32_0 = arith.constant 0 : i32
    %c0_i32_1 = arith.constant 0 : i32
    return %c0_i32, %c0_i32_0 : i32, i32
  }
  func.func @transform_6(%arg0: i32, %arg1: i32) -> (i32, i32) {
    %c0_i32 = arith.constant 0 : i32
    %c0_i32_0 = arith.constant 0 : i32
    %c0_i32_1 = arith.constant 0 : i32
    return %c0_i32, %c0_i32_0 : i32, i32
  }
  func.func @transform_7(%arg0: i32, %arg1: i32) -> (i32, i32) {
    %c0_i32 = arith.constant 0 : i32
    %c0_i32_0 = arith.constant 0 : i32
    %c0_i32_1 = arith.constant 0 : i32
    return %c0_i32, %c0_i32_0 : i32, i32
  }
  func.func @transform_8(%arg0: i32, %arg1: i32) -> (i32, i32) {
    %c0_i32 = arith.constant 0 : i32
    %c0_i32_0 = arith.constant 0 : i32
    %c0_i32_1 = arith.constant 0 : i32
    return %c0_i32, %c0_i32_0 : i32, i32
  }
  func.func @transform_9(%arg0: i32, %arg1: i32) -> (i32, i32) {
    %c0_i32 = arith.constant 0 : i32
    %c0_i32_0 = arith.constant 0 : i32
    %c0_i32_1 = arith.constant 0 : i32
    return %c0_i32, %c0_i32_0 : i32, i32
  }
  func.func @transform_10(%arg0: i32, %arg1: i32) -> (i32, i32) {
    %c0_i32 = arith.constant 0 : i32
    %c0_i32_0 = arith.constant 0 : i32
    %c0_i32_1 = arith.constant 0 : i32
    return %c0_i32, %c0_i32_0 : i32, i32
  }
  func.func @transform_11(%arg0: i32, %arg1: i32) -> (i32, i32, i32) {
    %c0_i32 = arith.constant 0 : i32
    %c0_i32_0 = arith.constant 0 : i32
    %c0_i32_1 = arith.constant 0 : i32
    return %arg0, %c0_i32, %c0_i32_0 : i32, i32, i32
  }
}

module attributes {stable_mosaic.version = 11 : i64} {
  func.func @prenorm_xattn_kernel(%arg0: i32, %arg1: i32, %arg2: memref<1x8x32xf32, #tpu.memory_space<vmem>>, %arg3: memref<1x16x16xf32, #tpu.memory_space<vmem>>, %arg4: memref<1x32xf32, #tpu.memory_space<vmem>>, %arg5: memref<1x32xf32, #tpu.memory_space<vmem>>, %arg6: memref<1x16xf32, #tpu.memory_space<vmem>>, %arg7: memref<1x16xf32, #tpu.memory_space<vmem>>, %arg8: memref<32x32xbf16, #tpu.memory_space<vmem>>, %arg9: memref<16x32xbf16, #tpu.memory_space<vmem>>, %arg10: memref<16x32xbf16, #tpu.memory_space<vmem>>, %arg11: memref<32x32xbf16, #tpu.memory_space<vmem>>, %arg12: memref<1x32xf32, #tpu.memory_space<vmem>>, %arg13: memref<1x8x32xf32, #tpu.memory_space<vmem>>, %arg14: memref<1x8x32xf32, #tpu.memory_space<vmem>>, %arg15: memref<1x8x1xf32, #tpu.memory_space<vmem>>, %arg16: memref<1x8x1xf32, #tpu.memory_space<vmem>>, %arg17: memref<1x8x32xf32, #tpu.memory_space<vmem>>) attributes {dimension_semantics = [#tpu.dimension_semantics<parallel>, #tpu.dimension_semantics<arbitrary>], iteration_bounds = array<i64: 2, 1>, scalar_prefetch = 0 : i64, scratch_operands = 4 : i64, tpu.core_type = #tpu.core_type<tc>, window_params = [{transform_indices = @transform_0, window_bounds = array<i64: 1, 8, 32>}, {transform_indices = @transform_1, window_bounds = array<i64: 1, 16, 16>}, {pipeline_mode = #tpu.pipeline_mode<synchronous>, transform_indices = @transform_2, window_bounds = array<i64: 1, 32>}, {pipeline_mode = #tpu.pipeline_mode<synchronous>, transform_indices = @transform_3, window_bounds = array<i64: 1, 32>}, {pipeline_mode = #tpu.pipeline_mode<synchronous>, transform_indices = @transform_4, window_bounds = array<i64: 1, 16>}, {pipeline_mode = #tpu.pipeline_mode<synchronous>, transform_indices = @transform_5, window_bounds = array<i64: 1, 16>}, {pipeline_mode = #tpu.pipeline_mode<synchronous>, transform_indices = @transform_6, window_bounds = array<i64: 32, 32>}, {pipeline_mode = #tpu.pipeline_mode<synchronous>, transform_indices = @transform_7, window_bounds = array<i64: 16, 32>}, {pipeline_mode = #tpu.pipeline_mode<synchronous>, transform_indices = @transform_8, window_bounds = array<i64: 16, 32>}, {pipeline_mode = #tpu.pipeline_mode<synchronous>, transform_indices = @transform_9, window_bounds = array<i64: 32, 32>}, {pipeline_mode = #tpu.pipeline_mode<synchronous>, transform_indices = @transform_10, window_bounds = array<i64: 1, 32>}, {transform_indices = @transform_11, window_bounds = array<i64: 1, 8, 32>}]} {
    %c0_i32 = arith.constant 0 : i32
    %0 = arith.cmpi eq, %arg1, %c0_i32 : i32
    %1 = arith.extui %0 : i1 to i32
    %c0_i32_0 = arith.constant 0 : i32
    %2 = arith.cmpi ne, %1, %c0_i32_0 : i32
    scf.if %2 {
      %c0_47 = arith.constant 0 : index
      %c0_48 = arith.constant 0 : index
      %c0_49 = arith.constant 0 : index
      %68 = vector.load %arg2[%c0_47, %c0_48, %c0_49] : memref<1x8x32xf32, #tpu.memory_space<vmem>>, vector<1x8x32xf32>
      %69 = vector.shape_cast %68 : vector<1x8x32xf32> to vector<8x32xf32>
      %c0_50 = arith.constant 0 : index
      %c0_51 = arith.constant 0 : index
      %70 = vector.load %arg4[%c0_50, %c0_51] : memref<1x32xf32, #tpu.memory_space<vmem>>, vector<1x32xf32>
      %c0_52 = arith.constant 0 : index
      %c0_53 = arith.constant 0 : index
      %71 = vector.load %arg5[%c0_52, %c0_53] : memref<1x32xf32, #tpu.memory_space<vmem>>, vector<1x32xf32>
      %cst_54 = arith.constant dense<0.000000e+00> : vector<8xf32>
      %72 = vector.multi_reduction <add>, %69, %cst_54 [1] : vector<8x32xf32> to vector<8xf32>
      %73 = vector.shape_cast %72 : vector<8xf32> to vector<8x1xf32>
      %cst_55 = arith.constant 3.200000e+01 : f32
      %74 = vector.broadcast %cst_55 : f32 to vector<8x1xf32>
      %75 = arith.divf %73, %74 : vector<8x1xf32>
      %76 = vector.broadcast %75 : vector<8x1xf32> to vector<8x32xf32>
      %77 = arith.subf %69, %76 : vector<8x32xf32>
      %78 = arith.mulf %77, %77 : vector<8x32xf32>
      %cst_56 = arith.constant dense<0.000000e+00> : vector<8xf32>
      %79 = vector.multi_reduction <add>, %78, %cst_56 [1] : vector<8x32xf32> to vector<8xf32>
      %80 = vector.shape_cast %79 : vector<8xf32> to vector<8x1xf32>
      %cst_57 = arith.constant 3.200000e+01 : f32
      %81 = vector.broadcast %cst_57 : f32 to vector<8x1xf32>
      %82 = arith.divf %80, %81 : vector<8x1xf32>
      %83 = vector.broadcast %75 : vector<8x1xf32> to vector<8x32xf32>
      %84 = arith.subf %69, %83 : vector<8x32xf32>
      %cst_58 = arith.constant 9.99999974E-6 : f32
      %85 = vector.broadcast %cst_58 : f32 to vector<8x1xf32>
      %86 = arith.addf %82, %85 : vector<8x1xf32>
      %87 = math.rsqrt %86 : vector<8x1xf32>
      %88 = vector.broadcast %87 : vector<8x1xf32> to vector<8x32xf32>
      %89 = arith.mulf %84, %88 : vector<8x32xf32>
      %90 = vector.broadcast %70 : vector<1x32xf32> to vector<8x32xf32>
      %91 = arith.mulf %89, %90 : vector<8x32xf32>
      %92 = vector.broadcast %71 : vector<1x32xf32> to vector<8x32xf32>
      %93 = arith.addf %91, %92 : vector<8x32xf32>
      %94 = arith.truncf %93 : vector<8x32xf32> to vector<8x32xbf16>
      %c0_59 = arith.constant 0 : index
      %c0_60 = arith.constant 0 : index
      %95 = vector.load %arg8[%c0_59, %c0_60] : memref<32x32xbf16, #tpu.memory_space<vmem>>, vector<32x32xbf16>
      %cst_61 = arith.constant dense<0.000000e+00> : vector<8x32xf32>
      %96 = tpu.matmul %94, %95, %cst_61 {dimension_numbers = #tpu.dot_dimension_numbers<[1], [0], [0], [1], [0, 0, 1, 1], [], []>} : vector<8x32xbf16>, vector<32x32xbf16>, vector<8x32xf32> -> vector<8x32xf32>
      %97 = vector.shape_cast %96 : vector<8x32xf32> to vector<1x8x32xf32>
      %c0_62 = arith.constant 0 : index
      %c0_63 = arith.constant 0 : index
      %c0_64 = arith.constant 0 : index
      %98 = vector.load %arg14[%c0_62, %c0_63, %c0_64] : memref<1x8x32xf32, #tpu.memory_space<vmem>>, vector<1x8x32xf32>
      tpu.vector_store %arg14[%c0_62, %c0_63, %c0_64], %97 {strides = array<i32>} : memref<1x8x32xf32, #tpu.memory_space<vmem>>, vector<1x8x32xf32>,
      %cst_65 = arith.constant 0xFF800000 : f32
      %99 = vector.broadcast %cst_65 : f32 to vector<1x8x1xf32>
      %c0_66 = arith.constant 0 : index
      %c0_67 = arith.constant 0 : index
      %c0_68 = arith.constant 0 : index
      %100 = vector.load %arg15[%c0_66, %c0_67, %c0_68] : memref<1x8x1xf32, #tpu.memory_space<vmem>>, vector<1x8x1xf32>
      tpu.vector_store %arg15[%c0_66, %c0_67, %c0_68], %99 {strides = array<i32>} : memref<1x8x1xf32, #tpu.memory_space<vmem>>, vector<1x8x1xf32>,
      %cst_69 = arith.constant 0.000000e+00 : f32
      %101 = vector.broadcast %cst_69 : f32 to vector<1x8x1xf32>
      %c0_70 = arith.constant 0 : index
      %c0_71 = arith.constant 0 : index
      %c0_72 = arith.constant 0 : index
      %102 = vector.load %arg16[%c0_70, %c0_71, %c0_72] : memref<1x8x1xf32, #tpu.memory_space<vmem>>, vector<1x8x1xf32>
      tpu.vector_store %arg16[%c0_70, %c0_71, %c0_72], %101 {strides = array<i32>} : memref<1x8x1xf32, #tpu.memory_space<vmem>>, vector<1x8x1xf32>,
      %cst_73 = arith.constant 0.000000e+00 : f32
      %103 = vector.broadcast %cst_73 : f32 to vector<1x8x32xf32>
      %c0_74 = arith.constant 0 : index
      %c0_75 = arith.constant 0 : index
      %c0_76 = arith.constant 0 : index
      %104 = vector.load %arg17[%c0_74, %c0_75, %c0_76] : memref<1x8x32xf32, #tpu.memory_space<vmem>>, vector<1x8x32xf32>
      tpu.vector_store %arg17[%c0_74, %c0_75, %c0_76], %103 {strides = array<i32>} : memref<1x8x32xf32, #tpu.memory_space<vmem>>, vector<1x8x32xf32>,
    } else {
    }
    %c0 = arith.constant 0 : index
    %c0_1 = arith.constant 0 : index
    %c0_2 = arith.constant 0 : index
    %3 = vector.load %arg3[%c0, %c0_1, %c0_2] : memref<1x16x16xf32, #tpu.memory_space<vmem>>, vector<1x16x16xf32>
    %4 = vector.shape_cast %3 : vector<1x16x16xf32> to vector<16x16xf32>
    %c0_3 = arith.constant 0 : index
    %c0_4 = arith.constant 0 : index
    %5 = vector.load %arg6[%c0_3, %c0_4] : memref<1x16xf32, #tpu.memory_space<vmem>>, vector<1x16xf32>
    %c0_5 = arith.constant 0 : index
    %c0_6 = arith.constant 0 : index
    %6 = vector.load %arg7[%c0_5, %c0_6] : memref<1x16xf32, #tpu.memory_space<vmem>>, vector<1x16xf32>
    %cst = arith.constant dense<0.000000e+00> : vector<16xf32>
    %7 = vector.multi_reduction <add>, %4, %cst [1] : vector<16x16xf32> to vector<16xf32>
    %8 = vector.shape_cast %7 : vector<16xf32> to vector<16x1xf32>
    %cst_7 = arith.constant 1.600000e+01 : f32
    %9 = vector.broadcast %cst_7 : f32 to vector<16x1xf32>
    %10 = arith.divf %8, %9 : vector<16x1xf32>
    %11 = vector.broadcast %10 : vector<16x1xf32> to vector<16x16xf32>
    %12 = arith.subf %4, %11 : vector<16x16xf32>
    %13 = arith.mulf %12, %12 : vector<16x16xf32>
    %cst_8 = arith.constant dense<0.000000e+00> : vector<16xf32>
    %14 = vector.multi_reduction <add>, %13, %cst_8 [1] : vector<16x16xf32> to vector<16xf32>
    %15 = vector.shape_cast %14 : vector<16xf32> to vector<16x1xf32>
    %cst_9 = arith.constant 1.600000e+01 : f32
    %16 = vector.broadcast %cst_9 : f32 to vector<16x1xf32>
    %17 = arith.divf %15, %16 : vector<16x1xf32>
    %18 = vector.broadcast %10 : vector<16x1xf32> to vector<16x16xf32>
    %19 = arith.subf %4, %18 : vector<16x16xf32>
    %cst_10 = arith.constant 9.99999974E-6 : f32
    %20 = vector.broadcast %cst_10 : f32 to vector<16x1xf32>
    %21 = arith.addf %17, %20 : vector<16x1xf32>
    %22 = math.rsqrt %21 : vector<16x1xf32>
    %23 = vector.broadcast %22 : vector<16x1xf32> to vector<16x16xf32>
    %24 = arith.mulf %19, %23 : vector<16x16xf32>
    %25 = vector.broadcast %5 : vector<1x16xf32> to vector<16x16xf32>
    %26 = arith.mulf %24, %25 : vector<16x16xf32>
    %27 = vector.broadcast %6 : vector<1x16xf32> to vector<16x16xf32>
    %28 = arith.addf %26, %27 : vector<16x16xf32>
    %29 = arith.truncf %28 : vector<16x16xf32> to vector<16x16xbf16>
    %c0_11 = arith.constant 0 : index
    %c0_12 = arith.constant 0 : index
    %30 = vector.load %arg9[%c0_11, %c0_12] : memref<16x32xbf16, #tpu.memory_space<vmem>>, vector<16x32xbf16>
    %cst_13 = arith.constant dense<0.000000e+00> : vector<16x32xf32>
    %31 = tpu.matmul %29, %30, %cst_13 {dimension_numbers = #tpu.dot_dimension_numbers<[1], [0], [0], [1], [0, 0, 1, 1], [], []>} : vector<16x16xbf16>, vector<16x32xbf16>, vector<16x32xf32> -> vector<16x32xf32>
    %32 = vector.shape_cast %31 : vector<16x32xf32> to vector<1x16x32xf32>
    %c0_14 = arith.constant 0 : index
    %c0_15 = arith.constant 0 : index
    %33 = vector.load %arg10[%c0_14, %c0_15] : memref<16x32xbf16, #tpu.memory_space<vmem>>, vector<16x32xbf16>
    %cst_16 = arith.constant dense<0.000000e+00> : vector<16x32xf32>
    %34 = tpu.matmul %29, %33, %cst_16 {dimension_numbers = #tpu.dot_dimension_numbers<[1], [0], [0], [1], [0, 0, 1, 1], [], []>} : vector<16x16xbf16>, vector<16x32xbf16>, vector<16x32xf32> -> vector<16x32xf32>
    %35 = vector.shape_cast %34 : vector<16x32xf32> to vector<1x16x32xf32>
    %c0_17 = arith.constant 0 : index
    %c0_18 = arith.constant 0 : index
    %c0_19 = arith.constant 0 : index
    %36 = vector.load %arg14[%c0_17, %c0_18, %c0_19] : memref<1x8x32xf32, #tpu.memory_space<vmem>>, vector<1x8x32xf32>
    %37 = arith.truncf %36 : vector<1x8x32xf32> to vector<1x8x32xbf16>
    %38 = arith.truncf %32 : vector<1x16x32xf32> to vector<1x16x32xbf16>
    "tpu.trace_start"() <{level = 10 : i32, message = "bnd,bmd->bnm"}> : () -> ()
    %cst_20 = arith.constant dense<0.000000e+00> : vector<1x8x16xf32>
    %39 = tpu.matmul %37, %38, %cst_20 {dimension_numbers = #tpu.dot_dimension_numbers<[2], [2], [1], [1], [0, 0, 0, 1, 1, 1], [0], [0]>} : vector<1x8x32xbf16>, vector<1x16x32xbf16>, vector<1x8x16xf32> -> vector<1x8x16xf32>
    "tpu.trace_stop"() : () -> ()
    %c0_21 = arith.constant 0 : index
    %c0_22 = arith.constant 0 : index
    %c0_23 = arith.constant 0 : index
    %40 = vector.load %arg15[%c0_21, %c0_22, %c0_23] : memref<1x8x1xf32, #tpu.memory_space<vmem>>, vector<1x8x1xf32>
    %cst_24 = arith.constant dense<0xFF800000> : vector<1x8xf32>
    %41 = vector.multi_reduction <maximumf>, %39, %cst_24 [2] : vector<1x8x16xf32> to vector<1x8xf32>
    %42 = vector.shape_cast %41 : vector<1x8xf32> to vector<1x8x1xf32>
    %43 = arith.maximumf %40, %42 : vector<1x8x1xf32>
    %c0_25 = arith.constant 0 : index
    %c0_26 = arith.constant 0 : index
    %c0_27 = arith.constant 0 : index
    %44 = vector.load %arg15[%c0_25, %c0_26, %c0_27] : memref<1x8x1xf32, #tpu.memory_space<vmem>>, vector<1x8x1xf32>
    %45 = arith.subf %44, %43 : vector<1x8x1xf32>
    %46 = math.exp %45 : vector<1x8x1xf32>
    %47 = vector.broadcast %43 : vector<1x8x1xf32> to vector<1x8x16xf32>
    %48 = arith.subf %39, %47 : vector<1x8x16xf32>
    %49 = math.exp %48 : vector<1x8x16xf32>
    %c0_28 = arith.constant 0 : index
    %c0_29 = arith.constant 0 : index
    %c0_30 = arith.constant 0 : index
    %50 = vector.load %arg16[%c0_28, %c0_29, %c0_30] : memref<1x8x1xf32, #tpu.memory_space<vmem>>, vector<1x8x1xf32>
    %51 = arith.mulf %46, %50 : vector<1x8x1xf32>
    %cst_31 = arith.constant dense<0.000000e+00> : vector<1x8xf32>
    %52 = vector.multi_reduction <add>, %49, %cst_31 [2] : vector<1x8x16xf32> to vector<1x8xf32>
    %53 = vector.shape_cast %52 : vector<1x8xf32> to vector<1x8x1xf32>
    %54 = arith.addf %51, %53 : vector<1x8x1xf32>
    %c0_32 = arith.constant 0 : index
    %c0_33 = arith.constant 0 : index
    %c0_34 = arith.constant 0 : index
    %55 = vector.load %arg16[%c0_32, %c0_33, %c0_34] : memref<1x8x1xf32, #tpu.memory_space<vmem>>, vector<1x8x1xf32>
    tpu.vector_store %arg16[%c0_32, %c0_33, %c0_34], %54 {strides = array<i32>} : memref<1x8x1xf32, #tpu.memory_space<vmem>>, vector<1x8x1xf32>,
    %c0_35 = arith.constant 0 : index
    %c0_36 = arith.constant 0 : index
    %c0_37 = arith.constant 0 : index
    %56 = vector.load %arg17[%c0_35, %c0_36, %c0_37] : memref<1x8x32xf32, #tpu.memory_space<vmem>>, vector<1x8x32xf32>
    %57 = vector.broadcast %46 : vector<1x8x1xf32> to vector<1x8x32xf32>
    %58 = arith.mulf %57, %56 : vector<1x8x32xf32>
    %59 = arith.truncf %49 : vector<1x8x16xf32> to vector<1x8x16xbf16>
    %60 = arith.truncf %35 : vector<1x16x32xf32> to vector<1x16x32xbf16>
    "tpu.trace_start"() <{level = 10 : i32, message = "bnm,bmd->bnd"}> : () -> ()
    %cst_38 = arith.constant dense<0.000000e+00> : vector<1x8x32xf32>
    %61 = tpu.matmul %59, %60, %cst_38 {dimension_numbers = #tpu.dot_dimension_numbers<[2], [1], [1], [2], [0, 0, 0, 1, 1, 2], [0], [0]>} : vector<1x8x16xbf16>, vector<1x16x32xbf16>, vector<1x8x32xf32> -> vector<1x8x32xf32>
    "tpu.trace_stop"() : () -> ()
    %62 = arith.addf %58, %61 : vector<1x8x32xf32>
    %c0_39 = arith.constant 0 : index
    %c0_40 = arith.constant 0 : index
    %c0_41 = arith.constant 0 : index
    %63 = vector.load %arg17[%c0_39, %c0_40, %c0_41] : memref<1x8x32xf32, #tpu.memory_space<vmem>>, vector<1x8x32xf32>
    tpu.vector_store %arg17[%c0_39, %c0_40, %c0_41], %62 {strides = array<i32>} : memref<1x8x32xf32, #tpu.memory_space<vmem>>, vector<1x8x32xf32>,
    %c0_42 = arith.constant 0 : index
    %c0_43 = arith.constant 0 : index
    %c0_44 = arith.constant 0 : index
    %64 = vector.load %arg15[%c0_42, %c0_43, %c0_44] : memref<1x8x1xf32, #tpu.memory_space<vmem>>, vector<1x8x1xf32>
    tpu.vector_store %arg15[%c0_42, %c0_43, %c0_44], %43 {strides = array<i32>} : memref<1x8x1xf32, #tpu.memory_space<vmem>>, vector<1x8x1xf32>,
    %c0_i32_45 = arith.constant 0 : i32
    %65 = arith.cmpi eq, %arg1, %c0_i32_45 : i32
    %66 = arith.extui %65 : i1 to i32
    %c0_i32_46 = arith.constant 0 : i32
    %67 = arith.cmpi ne, %66, %c0_i32_46 : i32
    scf.if %67 {
      %c0_47 = arith.constant 0 : index
      %c0_48 = arith.constant 0 : index
      %c0_49 = arith.constant 0 : index
      %68 = vector.load %arg16[%c0_47, %c0_48, %c0_49] : memref<1x8x1xf32, #tpu.memory_space<vmem>>, vector<1x8x1xf32>
      %69 = tpu.reciprocal %68 {approx = true} : vector<1x8x1xf32> -> vector<1x8x1xf32>
      %c0_50 = arith.constant 0 : index
      %c0_51 = arith.constant 0 : index
      %c0_52 = arith.constant 0 : index
      %70 = vector.load %arg17[%c0_50, %c0_51, %c0_52] : memref<1x8x32xf32, #tpu.memory_space<vmem>>, vector<1x8x32xf32>
      %71 = vector.broadcast %69 : vector<1x8x1xf32> to vector<1x8x32xf32>
      %72 = arith.mulf %70, %71 : vector<1x8x32xf32>
      %73 = arith.truncf %72 : vector<1x8x32xf32> to vector<1x8x32xbf16>
      %74 = vector.shape_cast %73 : vector<1x8x32xbf16> to vector<8x32xbf16>
      %c0_53 = arith.constant 0 : index
      %c0_54 = arith.constant 0 : index
      %75 = vector.load %arg11[%c0_53, %c0_54] : memref<32x32xbf16, #tpu.memory_space<vmem>>, vector<32x32xbf16>
      %cst_55 = arith.constant dense<0.000000e+00> : vector<8x32xf32>
      %76 = tpu.matmul %74, %75, %cst_55 {dimension_numbers = #tpu.dot_dimension_numbers<[1], [0], [0], [1], [0, 0, 1, 1], [], []>} : vector<8x32xbf16>, vector<32x32xbf16>, vector<8x32xf32> -> vector<8x32xf32>
      %c0_56 = arith.constant 0 : index
      %c0_57 = arith.constant 0 : index
      %77 = vector.load %arg12[%c0_56, %c0_57] : memref<1x32xf32, #tpu.memory_space<vmem>>, vector<1x32xf32>
      %78 = vector.broadcast %77 : vector<1x32xf32> to vector<8x32xf32>
      %79 = arith.addf %76, %78 : vector<8x32xf32>
      %80 = vector.shape_cast %79 : vector<8x32xf32> to vector<1x8x32xf32>
      %c0_58 = arith.constant 0 : index
      %c0_59 = arith.constant 0 : index
      %c0_60 = arith.constant 0 : index
      %81 = vector.load %arg13[%c0_58, %c0_59, %c0_60] : memref<1x8x32xf32, #tpu.memory_space<vmem>>, vector<1x8x32xf32>
      tpu.vector_store %arg13[%c0_58, %c0_59, %c0_60], %80 {strides = array<i32>} : memref<1x8x32xf32, #tpu.memory_space<vmem>>, vector<1x8x32xf32>,
    } else {
    }
    return
  }
  func.func @transform_0(%arg0: i32, %arg1: i32) -> (i32, i32, i32) {
    %c0_i32 = arith.constant 0 : i32
    %c0_i32_0 = arith.constant 0 : i32
    %c0_i32_1 = arith.constant 0 : i32
    return %arg0, %c0_i32, %c0_i32_0 : i32, i32, i32
  }
  func.func @transform_1(%arg0: i32, %arg1: i32) -> (i32, i32, i32) {
    %c0_i32 = arith.constant 0 : i32
    %c0_i32_0 = arith.constant 0 : i32
    return %arg0, %arg1, %c0_i32 : i32, i32, i32
  }
  func.func @transform_2(%arg0: i32, %arg1: i32) -> (i32, i32) {
    %c0_i32 = arith.constant 0 : i32
    %c0_i32_0 = arith.constant 0 : i32
    %c0_i32_1 = arith.constant 0 : i32
    return %c0_i32, %c0_i32_0 : i32, i32
  }
  func.func @transform_3(%arg0: i32, %arg1: i32) -> (i32, i32) {
    %c0_i32 = arith.constant 0 : i32
    %c0_i32_0 = arith.constant 0 : i32
    %c0_i32_1 = arith.constant 0 : i32
    return %c0_i32, %c0_i32_0 : i32, i32
  }
  func.func @transform_4(%arg0: i32, %arg1: i32) -> (i32, i32) {
    %c0_i32 = arith.constant 0 : i32
    %c0_i32_0 = arith.constant 0 : i32
    %c0_i32_1 = arith.constant 0 : i32
    return %c0_i32, %c0_i32_0 : i32, i32
  }
  func.func @transform_5(%arg0: i32, %arg1: i32) -> (i32, i32) {
    %c0_i32 = arith.constant 0 : i32
    %c0_i32_0 = arith.constant 0 : i32
    %c0_i32_1 = arith.constant 0 : i32
    return %c0_i32, %c0_i32_0 : i32, i32
  }
  func.func @transform_6(%arg0: i32, %arg1: i32) -> (i32, i32) {
    %c0_i32 = arith.constant 0 : i32
    %c0_i32_0 = arith.constant 0 : i32
    %c0_i32_1 = arith.constant 0 : i32
    return %c0_i32, %c0_i32_0 : i32, i32
  }
  func.func @transform_7(%arg0: i32, %arg1: i32) -> (i32, i32) {
    %c0_i32 = arith.constant 0 : i32
    %c0_i32_0 = arith.constant 0 : i32
    %c0_i32_1 = arith.constant 0 : i32
    return %c0_i32, %c0_i32_0 : i32, i32
  }
  func.func @transform_8(%arg0: i32, %arg1: i32) -> (i32, i32) {
    %c0_i32 = arith.constant 0 : i32
    %c0_i32_0 = arith.constant 0 : i32
    %c0_i32_1 = arith.constant 0 : i32
    return %c0_i32, %c0_i32_0 : i32, i32
  }
  func.func @transform_9(%arg0: i32, %arg1: i32) -> (i32, i32) {
    %c0_i32 = arith.constant 0 : i32
    %c0_i32_0 = arith.constant 0 : i32
    %c0_i32_1 = arith.constant 0 : i32
    return %c0_i32, %c0_i32_0 : i32, i32
  }
  func.func @transform_10(%arg0: i32, %arg1: i32) -> (i32, i32) {
    %c0_i32 = arith.constant 0 : i32
    %c0_i32_0 = arith.constant 0 : i32
    %c0_i32_1 = arith.constant 0 : i32
    return %c0_i32, %c0_i32_0 : i32, i32
  }
  func.func @transform_11(%arg0: i32, %arg1: i32) -> (i32, i32, i32) {
    %c0_i32 = arith.constant 0 : i32
    %c0_i32_0 = arith.constant 0 : i32
    %c0_i32_1 = arith.constant 0 : i32
    return %arg0, %c0_i32, %c0_i32_0 : i32, i32, i32
  }
}

</mosaic_0001>

<bundles_post_ra>
// kernel: tpu_custom_call.1
= control target key start
LH: loop header
LB: loop body
LE: loop exit
PB: predicated region body
PF: predicated region fallthrough
CT: control target
= control target key end

     0   :  { %s2211_s0 = inlined_call_operand.hbm [shape: f32[2,8,32], index: 0, kind: input, shape index: {}]   ;;  %s2212_s1 = inlined_call_operand.hbm [shape: f32[2,16,16], index: 1, kind: input, shape index: {}]   ;;  %s2213_s2 = inlined_call_operand.hbm [shape: f32[1,32], index: 2, kind: input, shape index: {}]   ;;  %s2214_s3 = inlined_call_operand.hbm [shape: f32[1,32], index: 3, kind: input, shape index: {}]   ;;  %s2215_s4 = inlined_call_operand.hbm [shape: f32[1,16], index: 4, kind: input, shape index: {}]   ;;  %s2216_s5 = inlined_call_operand.hbm [shape: f32[1,16], index: 5, kind: input, shape index: {}]   ;;  %s2217_s6 = inlined_call_operand.hbm [shape: bf16[32,32], index: 6, kind: input, shape index: {}]   ;;  %s2218_s7 = inlined_call_operand.hbm [shape: bf16[16,32], index: 7, kind: input, shape index: {}]   ;;  %s2219_s8 = inlined_call_operand.hbm [shape: bf16[16,32], index: 8, kind: input, shape index: {}]   ;;  %s2220_s9 = inlined_call_operand.vmem [shape: bf16[32,32], index: 9, kind: input, shape index: {}]   ;;  %s2221_s10 = inlined_call_operand.vmem [shape: f32[1,32], index: 10, kind: input, shape index: {}]   ;;  %s2222_s11 = inlined_call_operand.hbm [shape: f32[2,8,32], index: 11, kind: output, shape index: {}]  }
   0x1   :  { %2231 = sst [smem:[#allocation32_spill]] %s2211_s0 }
   0x2   :  { %2232 = sst [smem:[#allocation33_spill]] %s2213_s2 }
   0x3   :  { %2233 = sst [smem:[#allocation34_spill]] %s2214_s3 }
   0x4   :  { %2234 = sst [smem:[#allocation35_spill]] %s2215_s4 }
   0x5   :  { %2235 = sst [smem:[#allocation36_spill]] %s2216_s5 }
   0x6   :  { %2236 = sst [smem:[#allocation37_spill]] %s2217_s6 }
   0x7   :  { %2237 = sst [smem:[#allocation38_spill]] %s2218_s7 }
   0x8   :  { %2238 = sst [smem:[#allocation39_spill]] %s2219_s8 }
   0x9   :  { %16 = vsyncpa [#allocation7], 0 }
   0xa   :  { %18 = vsyncpa [#allocation7 + $0x1], 0 }
   0xb   :  { %19 = vsyncpa [#allocation10], 0 }
   0xc   :  { %21 = vsyncpa [#allocation10 + $0x1], 0 }
   0xd   :  { %22 = vsyncpa [#allocation13], 0 }
   0xe   :  { %23 = vsyncpa [#allocation16], 0 }
   0xf   :  { %24 = vsyncpa [#allocation19], 0 }
  0x10   :  { %25 = vsyncpa [#allocation8], 0 }
  0x11   :  { %27 = vsyncpa [#allocation8 + $0x1], 0  ;;  %s1884_s17 = smov 0   ;;  %s1886_s18 = smov 0  }
  0x12   :  { %s1888_s19 = smov 0   ;;  %s1890_s20 = smov 0  }
  0x13   :  { %s1892_s21 = smov 0   ;;  %s1894_s22 = smov 0  }
  0x14 LB: > { %2239 = sst [smem:[#allocation29_spill]] %s1800_s21  ;;  %s1915_s23 = sadd.s32 4294967295, %s1804_s22   ;;  %s1804_s22 = sphi %s1894_s22, %s33_s22   ;;  %s1800_s21 = sphi %s1892_s21, %s2273_s21   ;;  %s1796_s20 = sphi %s1890_s20, %s2272_s20   ;;  %s1792_s19 = sphi %s1888_s19, %s2276_s19   ;;  %s1788_s18 = sphi %s1886_s18, %s2275_s18   ;;  %s1784_s17 = sphi %s1884_s17, %s2274_s17  }
  0x15   : > { %p1199_p0 = scmp.ge.s32.totalorder %s1804_s22, 1  ;;  %p2223_p1 = scmp.eq.s32.totalorder %s1915_s23, 0 }
  0x16   : > { %p319_p2 = scmp.lt.s32.totalorder %s1804_s22, 3  ;;  %s1806_s25 = smov [#allocation11]  }
  0x17   : > { %s332_s26 = sshll.u32 %s1806_s25, 4  ;;  %s1807_s27 = smov [#allocation12]   ;;  %s333_s26 = int_to_ptr.vmem [resolvable:$true] %s332_s26 }
  0x18   : > { %p1920_p3 = pnand %p1199_p0, %p319_p2  ;;  %s343_s28 = sshll.u32 %s1807_s27, 4  ;;  %s344_s28 = int_to_ptr.vmem [resolvable:$true] %s343_s28 }
  0x19   : > { %s1808_s30 = smov [#allocation15]   ;;  %s1477_s14 = scalar_lea.vmem %s333_s26, 16 }
  0x1a   : > { %s2240_s24 = scalar_select %p1920_p3, 1, 0 }
  0x1b   : > { %p1334_p5 = pneg %p1920_p3  ;;  %s365_s12 = sshll.u32 %s1808_s30, 4  ;;  %s1933_s12 = int_to_ptr.vmem [resolvable:$true] %s365_s12 }
  0x1c   : > { %p1478_p8 = scmp.ne.s32.totalorder %s333_s26, %s1477_s14  ;;  %s1484_s15 = scalar_lea.vmem %s333_s26, 32 }
  0x1d   : > { %p1929_p6 = pnand %p1334_p5, %p2223_p1  ;;  %p1485_p11 = scmp.lt.s32.totalorder %s333_s26, %s333_s26 }
  0x1e   : > { %p1486_p12 = scmp.lt.s32.totalorder %s1484_s15, %s1477_s14 }
  0x1f   : > { %p1937_p7 = pneg %p1929_p6 }
  0x20   : > { %p1487_p13 = por %p1486_p12, %p1485_p11 }
  0x21   : > { %p1480_p9 = pnand %p1478_p8, %p1937_p7 }
  0x23   : > { %p1481_p10 = pneg %p1480_p9 }
  0x25   : > { %p1488_p0 = pnand %p1487_p13, %p1481_p10 }
  0x27   : > { %1491 = shalt.err (!%p1488_p0)
}
  0x28   : > { %s2243_s2 = sld [smem:[#allocation33_spill]]  ;;  %s1503_s27 = scalar_lea.vmem %s344_s28, 16 }
  0x29   : > { %p1504_p2 = scmp.ne.s32.totalorder %s344_s28, %s1503_s27  ;;  %s1510_s30 = scalar_lea.vmem %s344_s28, 32 }
  0x2a   : > { %p1511_p8 = scmp.lt.s32.totalorder %s344_s28, %s344_s28  ;;  %p1512_p9 = scmp.lt.s32.totalorder %s1510_s30, %s1503_s27 }
  0x2b   : > { %p1506_p5 = pnand %p1504_p2, %p1937_p7 }
  0x2c   : > { %p1513_p1 = por %p1512_p9, %p1511_p8 }
  0x2d   : > { %p1507_p4 = pneg %p1506_p5 }
  0x2e   : > { %1337 = dma.hbm_to_vmem [thread:$0]  (!%p1929_p6), %s2243_s2, 16, %s333_s26, [#allocation10]  }
  0x2f   : > { %p1514_p3 = pnand %p1513_p1, %p1507_p4 }
  0x31   : > { %1517 = shalt.err (!%p1514_p3)
}
  0x32   : > { %s2244_s3 = sld [smem:[#allocation34_spill]]  ;;  %s1529_s26 = scalar_lea.vmem %s1933_s12, 16 }
  0x33   : > { %p1530_p10 = scmp.ne.s32.totalorder %s1933_s12, %s1529_s26  ;;  %s1536_s16 = scalar_lea.vmem %s1933_s12, 32 }
  0x34   : > { %p1537_p1 = scmp.lt.s32.totalorder %s1933_s12, %s1933_s12  ;;  %p1538_p3 = scmp.lt.s32.totalorder %s1536_s16, %s1529_s26 }
  0x35   : > { %p1532_p11 = pnand %p1530_p10, %p1937_p7 }
  0x36   : > { %p1539_p4 = por %p1538_p3, %p1537_p1 }
  0x37   : > { %p1533_p12 = pneg %p1532_p11 }
  0x38   : > { %1340 = dma.hbm_to_vmem [thread:$0]  (!%p1929_p6), %s2244_s3, 16, %s344_s28, [#allocation13]  }
  0x39   : > { %p1540_p13 = pnand %p1539_p4, %p1533_p12 }
  0x3b   : > { %1543 = shalt.err (!%p1540_p13)
}
  0x3c   : > { %s2245_s5 = sld [smem:[#allocation36_spill]]  ;;  %s1809_s28 = smov [#allocation18]  }
  0x3d   : > { %s388_s30 = sshll.u32 %s1809_s28, 4  ;;  %s1810_s14 = smov [#allocation14]   ;;  %s389_s30 = int_to_ptr.vmem [resolvable:$true] %s388_s30 }
  0x3e   : > { %s354_s15 = sshll.u32 %s1810_s14, 4  ;;  %s1555_s2 = scalar_lea.vmem %s389_s30, 128  ;;  %s355_s15 = int_to_ptr.vmem [resolvable:$true] %s354_s15 }
  0x3f   : > { %p1556_p0 = scmp.ne.s32.totalorder %s389_s30, %s1555_s2  ;;  %p1563_p8 = scmp.lt.s32.totalorder %s389_s30, %s389_s30 }
  0x40   : > { %p1564_p9 = scmp.lt.s32.totalorder %s1555_s2, %s1555_s2 }
  0x41   : > { %p1558_p2 = pnand %p1556_p0, %p1937_p7 }
  0x42   : > { %1346 = dma.hbm_to_vmem [thread:$0]  (!%p1929_p6), %s2245_s5, 16, %s1933_s12, [#allocation16]  }
  0x43   : > { %p1559_p5 = pneg %p1558_p2  ;;  %p1565_p10 = por %p1564_p9, %p1563_p8 }
  0x45   : > { %p1566_p11 = pnand %p1565_p10, %p1559_p5 }
  0x47   : > { %1569 = shalt.err (!%p1566_p11)
}
  0x48   : > { %s2225_s26 = smov 64   ;;  %s2227_s16 = smov 4  }
  0x49   : > { %s2246_s7 = sld [smem:[#allocation38_spill]]  ;;  %s1581_s27 = scalar_lea.vmem %s355_s15, 16 }
  0x4a   : > { %p1582_p12 = scmp.ne.s32.totalorder %s355_s15, %s1581_s27  ;;  %s1588_s2 = scalar_lea.vmem %s355_s15, 32 }
  0x4b   : > { %p1589_p4 = scmp.lt.s32.totalorder %s355_s15, %s355_s15  ;;  %p1590_p13 = scmp.lt.s32.totalorder %s1588_s2, %s1581_s27 }
  0x4c   : > { %p1584_p1 = pnand %p1582_p12, %p1937_p7 }
  0x4d   : > { %p1591_p0 = por %p1590_p13, %p1589_p4 }
  0x4e   : > { %p1585_p3 = pneg %p1584_p1 }
  0x4f   : > { %1352 = dma.hbm_to_vmem [thread:$0]  (!%p1929_p6), %s2246_s7, 128, %s389_s30, [#allocation19], %s2225_s26, %s2225_s26, %s2227_s16  }
  0x50   : > { %p1592_p2 = pnand %p1591_p0, %p1585_p3 }
  0x52   : > { %1595 = shalt.err (!%p1592_p2)
}
  0x53   : > { %s2247_s4 = sld [smem:[#allocation35_spill]]  ;;  %s1813_s30 = smov [#allocation17]  }
  0x54   : > { %s375_s12 = sshll.u32 %s1813_s30, 4  ;;  %s1814_s25 = smov [#allocation20]   ;;  %s376_s12 = int_to_ptr.vmem [resolvable:$true] %s375_s12 }
  0x55   : > { %s401_s26 = sshll.u32 %s1814_s25, 4  ;;  %s1607_s16 = scalar_lea.vmem %s376_s12, 256  ;;  %s402_s26 = int_to_ptr.vmem [resolvable:$true] %s401_s26 }
  0x56   : > { %p1608_p5 = scmp.ne.s32.totalorder %s376_s12, %s1607_s16  ;;  %p1615_p10 = scmp.lt.s32.totalorder %s376_s12, %s376_s12 }
  0x57   : > { %p1616_p11 = scmp.lt.s32.totalorder %s1607_s16, %s1607_s16 }
  0x58   : > { %p1610_p8 = pnand %p1608_p5, %p1937_p7 }
  0x59   : > { %1343 = dma.hbm_to_vmem [thread:$0]  (!%p1929_p6), %s2247_s4, 16, %s355_s15, [#allocation13]  }
  0x5a   : > { %p1611_p9 = pneg %p1610_p8  ;;  %p1617_p12 = por %p1616_p11, %p1615_p10 }
  0x5c   : > { %p1618_p1 = pnand %p1617_p12, %p1611_p9 }
  0x5e   : > { %1621 = shalt.err (!%p1618_p1)
}
  0x5f   : > { %s2248_s27 = smov 4   ;;  %s2249_s2 = smov 64  }
  0x60   : > { %s2250_s6 = sld [smem:[#allocation37_spill]]  ;;  %s1633_s14 = scalar_lea.vmem %s402_s26, 128 }
  0x61   : > { %p1634_p3 = scmp.ne.s32.totalorder %s402_s26, %s1633_s14  ;;  %p1641_p0 = scmp.lt.s32.totalorder %s402_s26, %s402_s26 }
  0x62   : > { %p1642_p2 = scmp.lt.s32.totalorder %s1633_s14, %s1633_s14 }
  0x63   : > { %p1636_p4 = pnand %p1634_p3, %p1937_p7 }
  0x64   : > { %p1643_p5 = por %p1642_p2, %p1641_p0 }
  0x65   : > { %p1637_p13 = pneg %p1636_p4 }
  0x66   : > { %1349 = dma.hbm_to_vmem [thread:$0]  (!%p1929_p6), %s2250_s6, 256, %s376_s12, [#allocation16], %s2249_s2, %s2249_s2, %s2248_s27  }
  0x67   : > { %p1644_p8 = pnand %p1643_p5, %p1637_p13 }
  0x69   : > { %1647 = shalt.err (!%p1644_p8)
}
  0x6a   : > { %s2251_s8 = sld [smem:[#allocation39_spill]]  ;;  %s1198_s29 = sadd.s32 4294967294, %s1804_s22  }
  0x6b   : > { %s45_s13 = sadd.s32 1, %s1800_s21  ;;  %s52_s12 = sadd.s32 1, %s1792_s19 }
  0x6c   : > { %p47_p7 = scmp.ge.s32.totalorder %s45_s13, 2  ;;  %p59_p9 = scmp.ne.s32.totalorder %s1792_s19, %s1788_s18 }
  0x6d   : > { %p60_p10 = scmp.eq.s32.totalorder %s1804_s22, 0  ;;  %p65_p11 = scmp.ne.s32.totalorder %s1788_s18, %s1784_s17 }
  0x6e   : > { %s2278_s13 = smov (%p47_p7, %s45_s13), 0  ;;  %p2254_p1 = scmp.eq.s32.totalorder %s1915_s23, 0 }
  0x6f   : > { %2252 = sst [smem:[#allocation30_spill]] %s2278_s13  ;;  %p2015_p12 = por %p60_p10, %p59_p9 }
  0x70   : > { %1355 = dma.hbm_to_vmem [thread:$0]  (!%p1929_p6), %s2251_s8, 128, %s402_s26, [#allocation19], %s2249_s2, %s2249_s2, %s2248_s27  }
  0x71   : > { %p2021_p6 = por %p2254_p1, %p65_p11  ;;  %s49_s27 = ssub.s32 %s1800_s21, %s2278_s13 }
  0x72   : > { %p306_p3 = scmp.eq.s32.totalorder %s1915_s23, 1  ;;  %p50_p4 = scmp.eq.s32.totalorder %s49_s27, 0 }
  0x73   : > { %p312_p13 = scmp.eq.s32.totalorder %s1198_s29, 1  ;;  %p1374_p2 = scmp.lt.s32.totalorder %s1804_s22, 2 }
  0x74   : > { %p2028_p0 = por %p306_p3, %p59_p9  ;;  %s421_s14 = sand.u32 1, %s1792_s19  }
  0x75   : > { %s2034_s15 = scalar_select %p50_p4, %s1792_s19, %s52_s12  }
  0x76   : > { %p2036_p5 = por %p312_p13, %p65_p11  ;;  %s1208_s16 = sshll.u32 %s421_s14, 3 }
  0x77   : > { %2257 = sst [smem:[#allocation31_spill]] %s2034_s15  ;;  %s1209_s30 = sshll.u32 %s1800_s21, 7 }
  0x78   : > { %s2259_s0 = sld [smem:[#allocation32_spill]]  ;;  %s425_s27 = scalar_lea.vmem [#allocation6], %s1208_s16 }
  0x79   : > { %s432_s29 = sshll.u32 %s425_s27, 4  ;;  %p2047_p8 = pnand %p1374_p2, %p2015_p12  ;;  %s433_s29 = int_to_ptr.vmem [resolvable:$true] %s432_s29 }
  0x7a   : > { %s1210_s12 = sshll.u32 %s421_s14, 4  ;;  %s1245_s7 = sshll.u32 %s1800_s21, 8 }
  0x7b   : > { %s422_s8 = scalar_lea.sflag [#allocation7], %s421_s14  ;;  %p1650_p7 = pneg %p2047_p8 }
  0x7c   : > { %s1661_s13 = scalar_lea.vmem %s433_s29, 128  ;;  %s1815_s3 = smov [#allocation6]  }
  0x7d   : > { %p1662_p9 = scmp.ne.s32.totalorder %s433_s29, %s1661_s13  ;;  %s1666_s4 = sshll.u32 %s1815_s3, 4  ;;  %s1667_s4 = int_to_ptr.vmem [resolvable:$false] %s1666_s4 }
  0x7e   : > { %s430_s5 = scalar_lea.hbm %s2259_s0, %s1209_s30  ;;  %s1668_s25 = scalar_lea.vmem %s1667_s4, 256 }
  0x7f   : > { %p1664_p10 = pnand %p1662_p9, %p1650_p7  ;;  %p1669_p12 = scmp.lt.s32.totalorder %s433_s29, %s1667_s4 }
  0x80   : > { %p1670_p1 = scmp.lt.s32.totalorder %s1668_s25, %s1661_s13 }
  0x81   : > { %p1665_p11 = pneg %p1664_p10 }
  0x82   : > { %p1671_p3 = por %p1670_p1, %p1669_p12 }
  0x84   : > { %p1672_p4 = pnand %p1671_p3, %p1665_p11 }
  0x86   : > { %1675 = shalt.err (!%p1672_p4)
}
  0x87   : > { %1359 = dma.hbm_to_vmem [thread:$0]  (!%p2047_p8), %s430_s5, 128, %s433_s29, %s422_s8  }
  0x88   : > { %s443_s14 = scalar_lea.vmem [#allocation9], %s1210_s12  ;;  %s439_s30 = sand.u32 1, %s1804_s22  }
  0x89   : > { %s452_s16 = sshll.u32 %s443_s14, 4  ;;  %s451_s3 = scalar_lea.hbm %s2212_s1, %s1245_s7  ;;  %s453_s16 = int_to_ptr.vmem [resolvable:$true] %s452_s16 }
  0x8a   : > { %s440_s21 = scalar_lea.sflag [#allocation10], %s439_s30  ;;  %s1689_s15 = scalar_lea.vmem %s453_s16, 256 }
  0x8b   : > { %p1690_p13 = scmp.ne.s32.totalorder %s453_s16, %s1689_s15  ;;  %s1816_s13 = smov [#allocation9]  }
  0x8c   : > { %s1694_s4 = sshll.u32 %s1816_s13, 4  ;;  %s1695_s4 = int_to_ptr.vmem [resolvable:$false] %s1694_s4 }
  0x8d   : > { %p1692_p2 = pnand %p1690_p13, %p1650_p7  ;;  %s1696_s25 = scalar_lea.vmem %s1695_s4, 512 }
  0x8e   : > { %p1697_p10 = scmp.lt.s32.totalorder %s453_s16, %s1695_s4  ;;  %p1698_p11 = scmp.lt.s32.totalorder %s1696_s25, %s1689_s15 }
  0x8f   : > { %p1693_p9 = pneg %p1692_p2 }
  0x90   : > { %p1699_p12 = por %p1698_p11, %p1697_p10 }
  0x92   : > { %p1700_p1 = pnand %p1699_p12, %p1693_p9 }
  0x94   : > { %1703 = shalt.err (!%p1700_p1)
}
  0x95   : > { %s1817_s5 = smov 128   ;;  %s1818_s0 = smov 8  }
  0x96   : > { %1362 = dma.hbm_to_vmem [thread:$0]  (!%p2047_p8), %s451_s3, 256, %s453_s16, %s440_s21, %s1817_s5, %s1817_s5, %s1818_s0  }
  0x97   : > { %p2261_p3 = scmp.ne.s32.totalorder %s2240_s24, 0 }
  0x98   : > { %s2071_s7 = sand.u32 (!%p2261_p3), 1, %s1788_s18  }
  0x99   : > { %464 = sbr.rel (%p2261_p3) target bundleno = 1673 (0x689), region = 64  ;;  %s1214_s8 = sshll.u32 (!%p2261_p3), %s2071_s7, 3 }
  0x9a   : > { %s467_s15 = scalar_lea.sflag (!%p2261_p3), [#allocation7], %s2071_s7  ;;  %s470_s29 = scalar_lea.vmem (!%p2261_p3), [#allocation6], %s1214_s8 }
  0x9e   : > { %1755 = dma.done.wait (%p2021_p6), %s467_s15, 128  }
  0x9f   : > { %1757 = vsyncadd (%p2021_p6), %s467_s15, 4294967168  ;;  %s475_s6 = sand.u32 1, %s1915_s23   ;;  %s1215_s21 = sshll.u32 %s2071_s7, 4 }
  0xa0   : > { %s476_s24 = scalar_lea.sflag [#allocation10], %s475_s6  ;;  %s479_s12 = scalar_lea.vmem [#allocation9], %s1215_s21 }
  0xa1   : > { %1759 = dma.done.wait (%p2021_p6), %s476_s24, 256  }
  0xa2   : > { %1761 = vsyncadd (%p2021_p6), %s476_s24, 4294967040  ;;  %p2262_p8 = scmp.eq.s32.totalorder %s1915_s23, 0 }
  0xa4   : > { %1763 = dma.done.wait (%p2262_p8), [#allocation10], 16   ;;  %p2263_p7 = pmov %p2262_p8 }
  0xa6   : > { %1765 = vsyncadd (%p2263_p7), [#allocation10], 4294967280  ;;  %p2264_p4 = pmov %p2263_p7 }
  0xa8   : > { %1767 = dma.done.wait (%p2264_p4), [#allocation13], 32   ;;  %p2265_p13 = pmov %p2264_p4 }
  0xa9   : > { %p2266_p2 = pmov %p2264_p4 }
  0xaa   : > { %1769 = vsyncadd (%p2265_p13), [#allocation13], 4294967264 }
  0xab   : > { %1771 = dma.done.wait (%p2266_p2), [#allocation16], 272   ;;  %p2267_p9 = pmov %p2266_p2 }
  0xac   : > { %p2268_p6 = pmov %p2266_p2 }
  0xad   : > { %1773 = vsyncadd (%p2267_p9), [#allocation16], 4294967024 }
  0xae   : > { %1775 = dma.done.wait (%p2268_p6), [#allocation19], 256   ;;  %p2269_p10 = pmov %p2266_p2 }
  0xaf   : > { %vm658_vm0 = vcmask 130048   ;;  %vm560_vm1 = vcmask 261120   ;;  %v654_v0 = vld [vmem:[%s479_s12] sm:$0xff]  ;;  %v655_v1 = vld [vmem:[%s479_s12 + $0x8] sm:$0xff]  ;;  %v1819_v23 = vmov 0.0   ;;  %vm1820_vm2 = vmmov 0  }
  0xb0   : > { %1777 = vsyncadd (%p2269_p10), [#allocation19], 4294967040  ;;  %v557_v2 = vld [vmem:[%s470_s29] sm:$0xff]  ;;  %v659_v3 = vsel %vm658_vm0, %v654_v0, 0.0  ;;  %v662_v4 = vsel %vm658_vm0, %v655_v1, 0.0  ;;  %1260 = vmatprep.subr.bf16.mxu0 %v1819_v23  ;;  %653 = vst.msk [vmem:[#allocation5] sm:$0xff] %vm560_vm1, %v1819_v23  ;;  %1268 = vmatprep.subr.bf16.mxu1 %v1819_v23 }
  0xb1   : > { %v561_v5 = vsel %vm560_vm1, %v557_v2, 0.0  ;;  %660 = vadd.xlane.f32.xlu0 %v659_v3  ;;  %v1448_v21 = vld [vmem:[#allocation17 + $0x8] sm:$0xff]   ;;  %v1450_v22 = vld [vmem:[#allocation18] sm:$0xff]   ;;  %v1449_v24 = vld [vmem:[#allocation17] sm:$0xff]   ;;  %1264 = vmatprep.mubr.msk.bf16.mxu0 %vm1820_vm2, %v1819_v23  ;;  %vm650_vm3 = vcmask 7168   ;;  %s1242_s3 = sshll.u32 %s1796_s20, 7 }
  0xb2   : > { %562 = vadd.xlane.f32.xlu1 %v561_v5  ;;  %1261 = vmatpush3.bf16.msra.mxu0 %v1448_v21  ;;  %v1229_v36 = vld [vmem:[#allocation14] ss:$0 sm:$0xff]  ;;  %v1224_v39 = vld [vmem:[#allocation11] ss:$0 sm:$0xff]  ;;  %v1230_v43 = vld [vmem:[#allocation15] ss:$0 sm:$0xff]  ;;  %s2162_s0 = scalar_lea.hbm %s2222_s11, %s1242_s3 }
  0xb3   : > { %1269 = vmatpush3.bf16.msra.mxu1 %v1450_v22  ;;  %1262 = vmatprep.subr.bf16.mxu0 %v1819_v23  ;;  %v1225_v44 = vld [vmem:[#allocation12] ss:$0 sm:$0xff]  ;;  %652 = vst.msk [vmem:[#allocation4] sm:$0xff] %vm650_vm3, %v1819_v23  ;;  %s550_s13 = scalar_lea.vmem [#allocation21], %s1214_s8  ;;  %s1014_s20 = scalar_lea.sflag [#allocation8], %s2071_s7 }
  0xb4   : > { %1270 = vmatprep.mubr.msk.bf16.mxu1 %vm1820_vm2, %v1819_v23  ;;  %1274 = vmatprep.subr.bf16.mxu1 %v1819_v23  ;;  %v1451_v50 = vld [vmem:[#allocation20] sm:$0xff]   ;;  %s1027_s4 = sshll.u32 %s550_s13, 4  ;;  %s1823_s8 = smov [#allocation21]   ;;  %s2164_s4 = int_to_ptr.vmem [resolvable:$true] %s1027_s4 }
  0xb5   : > { %663 = vadd.xlane.f32.xlu0 %v662_v4  ;;  %s1704_s15 = scalar_lea.vmem %s2164_s4, 128  ;;  %s1708_s29 = sshll.u32 %s1823_s8, 4  ;;  %s1709_s29 = int_to_ptr.vmem [resolvable:$false] %s1708_s29 }
  0xb6   : > { %1263 = vmatpush3.bf16.msra.mxu0 %v1449_v24  ;;  %p1705_p11 = scmp.ne.s32.totalorder %s2164_s4, %s1704_s15  ;;  %s1710_s6 = scalar_lea.vmem %s1709_s29, 256 }
  0xb7   : > { %1280 = vmatprep.subr.bf16.mxu0 %v1819_v23  ;;  %p1711_p3 = scmp.lt.s32.totalorder %s2164_s4, %s1709_s29  ;;  %p1712_p8 = scmp.lt.s32.totalorder %s1710_s6, %s1704_s15 }
  0xb8   : > { %p1706_p12 = pnand %p1705_p11, %p2028_p0 }
  0xb9   : > { %p1713_p7 = por %p1712_p8, %p1711_p3 }
  0xba   : > { %p1707_p1 = pneg %p1706_p12 }
  0xbc   : > { %p1714_p4 = pnand %p1713_p7, %p1707_p1 }
 0x13a   : > { %v661_v6 = vpop.xlane.xlu0 %660 }
 0x13b   : > { %v563_v7 = vpop.xlane.xlu1 %562  ;;  %v666_v8 = vmul.f32 0.0625, %v661_v6  ;;  %v1821_v6 = vmov -inf  }
 0x13c   : > { %v565_v9 = vmul.f32 0.03125, %v563_v7  ;;  %651 = vst.msk [vmem:[#allocation3] sm:$0xff] %vm650_vm3, %v1821_v6 }
 0x13d   : > { %v668_v10 = vsub.f32 %v654_v0, %v666_v8 }
 0x13e   : > { %v566_v11 = vsub.f32 %v557_v2, %v565_v9  ;;  %v664_v12 = vpop.xlane.xlu0 %663 }
 0x13f   : > { %v667_v13 = vmul.f32 0.0625, %v664_v12  ;;  %v670_v14 = vmul.f32 %v668_v10, %v668_v10  ;;  %v1822_v12 = vmov 0  }
 0x140   : > { %v567_v15 = vmul.f32 %v566_v11, %v566_v11  ;;  %1446 = vset.pattern.permute.xlu1 %v1822_v12  ;;  %1447 = vset.pattern.permute.xlu0 %v1822_v12 }
 0x141   : > { %v669_v16 = vsub.f32 %v655_v1, %v667_v13  ;;  %v672_v17 = vsel %vm658_vm0, %v670_v14, 0.0 }
 0x142   : > { %673 = vadd.xlane.f32.xlu1 %v672_v17  ;;  %v568_v19 = vsel %vm560_vm1, %v567_v15, 0.0 }
 0x143   : > { %v671_v18 = vmul.f32 %v669_v16, %v669_v16  ;;  %v854_v13 = vld [vmem:[#allocation3] sm:$0xff] }
 0x145   : > { %v675_v20 = vsel %vm658_vm0, %v671_v18, 0.0 }
 0x146   : > { %676 = vadd.xlane.f32.xlu0 %v675_v20  ;;  %569 = vadd.xlane.f32.xlu1 %v568_v19 }
 0x1cb   : > { %v674_v25 = vpop.xlane.xlu1 %673 }
 0x1cc   : > { %v678_v26 = vmul.f32 0.0625, %v674_v25 }
 0x1ce   : > { %v680_v27 = vadd.f32 1e-05, %v678_v26  ;;  %v1452_v26 = vld [vmem:[%s2220_s9 + $0x8] sm:$0xff]  }
 0x1cf   : > { %v677_v28 = vpop.xlane.xlu0 %676  ;;  %v570_v29 = vpop.xlane.xlu1 %569 }
 0x1d0   : > { %1454 = vrsqrt.f32 %v680_v27  ;;  %v679_v30 = vmul.f32 0.0625, %v677_v28  ;;  %v571_v31 = vmul.f32 0.03125, %v570_v29  ;;  %v870_v27 = vld [vmem:[#allocation4] sm:$0xff] }
 0x1d2   : > { %v681_v32 = vadd.f32 1e-05, %v679_v30  ;;  %v572_v33 = vadd.f32 1e-05, %v571_v31 }
 0x1d4   : > { %1456 = vrsqrt.f32 %v681_v32  ;;  %v1453_v32 = vld [vmem:[%s2220_s9] sm:$0xff]  }
 0x1d5   : > { %1458 = vrsqrt.f32 %v572_v33 }
 0x1dd   : > { %v1455_v34 = vpop.eup %1454 }
 0x1de   : > { %v684_v35 = vmul.f32 %v1455_v34, %v668_v10  ;;  %v878_v34 = vld [vmem:[#allocation5] sm:$0xff] }
 0x1e0   : > { %v692_v41 = vmul.f32 %v1229_v36, %v684_v35 }
 0x1e1   : > { %v1457_v37 = vpop.eup %1456 }
 0x1e2   : > { %v1459_v38 = vpop.eup %1458  ;;  %v685_v40 = vmul.f32 %v1457_v37, %v669_v16  ;;  %v700_v47 = vadd.f32 %v1230_v43, %v692_v41 }
 0x1e3   : > { %v574_v42 = vmul.f32 %v1459_v38, %v566_v11 }
 0x1e4   : > { %v693_v45 = vmul.f32 %v1229_v36, %v685_v40 }
 0x1e5   : > { %v581_v46 = vmul.f32 %v1224_v39, %v574_v42 }
 0x1e6   : > { %v701_v48 = vadd.f32 %v1230_v43, %v693_v45  ;;  %v1237_v45 = vld [vmem:[%s2221_s10] ss:$0 sm:$0xff] }
 0x1e7   : > { %v588_v49 = vadd.f32 %v1225_v44, %v581_v46 }
 0x1e8   : > { %v702_v51 = vpack.c.bf16 %v701_v48, %v700_v47 }
 0x1e9   : > { %v589_v52 = vpack.c.bf16 %v588_v49, %v588_v49 }
 0x1ea   : > { %1271 = vmatmul.mubr.msk.bf16.vlgmr.msra.gmra.mxu1 %vm658_vm0, %v702_v51 }
 0x1eb   : > { %1265 = vmatmul.mubr.msk.bf16.vlgmr.msra.gmra.mxu0 %vm560_vm1, %v589_v52  ;;  %1275 = vmatpush3.bf16.msra.mxu1 %v1451_v50 }
 0x1ec   : > { %1276 = vmatprep.mubr.msk.bf16.mxu1 %vm1820_vm2, %v1819_v23  ;;  %1282 = vmatprep.mubr.msk.bf16.mxu0 %vm1820_vm2, %v1819_v23 }
 0x1ed   : > { %1286 = vmatprep.subr.bf16.mxu1 %v1819_v23 }
 0x1f2   : > { %1277 = vmatmul.mubr.msk.bf16.vlgmr.msra.gmra.mxu1 %vm658_vm0, %v702_v51 }
 0x1f3   : > { %1288 = vmatprep.mubr.msk.bf16.mxu1 %vm1820_vm2, %v1819_v23 }
 0x2aa   : > { %v748_v53 = vpop.f32.mrf.mxu1 }
 0x2ab   : > { %v643_v54 = vpop.f32.mrf.mxu0 }
 0x2ac   : > { %649 = vst.msk [vmem:[#allocation2] sm:$0xff] %vm560_vm1, %v643_v54  ;;  %v1272_v55 = vpop.f32.mrf.mxu1 }
 0x2ad   : > { %v1266_v56 = vpop.f32.mrf.mxu0 }
 0x2ae   : > { %v751_v57 = vpop.f32.mrf.mxu1 }
 0x2af   : > { %v646_v58 = vpop.f32.mrf.mxu0  ;;  %v806_v59 = vpack.c.bf16 %v751_v57, %v748_v53 }
 0x2b0   : > { %v1273_v60 = vpop.f32.mrf.mxu1 }
 0x2b1   : > { %v812_v61 = vsel %vm560_vm1, %v806_v59, 0  ;;  %v1267_v62 = vpop.f32.mrf.mxu0 }
 0x2b2   : > { %v797_v63 = vpop.f32.mrf.mxu1  ;;  %1281 = vmatpush3.bf16.xpose.msra.mxu0 %v812_v61 }
 0x2b3   : > { %1292 = vmatprep.subr.bf16.mxu0 %v1819_v23  ;;  %v804_v1 = vld [vmem:[#allocation2] sm:$0xff] }
 0x2b4   : > { %v1278_v0 = vpop.f32.mrf.mxu1  ;;  %v805_v4 = vpack.c.bf16 %v804_v1, %v804_v1 }
 0x2b6   : > { %v800_v2 = vpop.f32.mrf.mxu1 }
 0x2b7   : > { %v886_v3 = vpack.c.bf16 %v800_v2, %v797_v63 }
 0x2b8   : > { %v1279_v5 = vpop.f32.mrf.mxu1 }
 0x2b9   : > { %1283 = vmatmul.mubr.msk.bf16.vlgmr.msra.gmra.mxu0 %vm560_vm1, %v805_v4  ;;  %1287 = vmatpush3.bf16.msra.mxu1 %v886_v3 }
 0x2ba   : > { %1296 = vmatprep.mubr.msk.bf16.mxu0 %vm1820_vm2, %v1819_v23  ;;  %1293 = vmatpush3.bf16.msra.mxu0 %v1452_v26 }
 0x2bb   : > { %1294 = vmatprep.subr.bf16.mxu0 %v1819_v23 }
 0x2be   : > { %1295 = vmatpush3.bf16.msra.mxu0 %v1453_v32 }
 0x379   : > { %v848_v7 = vpop.f32.mrf.mxu0 }
 0x37a   : > { %v855_v8 = vsel %vm658_vm0, %v848_v7, -inf }
 0x37b   : > { %856 = vmax.xlane.f32.xlu0 %v855_v8  ;;  %v1284_v9 = vpop.f32.mrf.mxu0 }
 0x37d   : > { %v851_v10 = vpop.f32.mrf.mxu0 }
 0x37f   : > { %v1285_v11 = vpop.f32.mrf.mxu0 }
 0x404   : > { %v857_v14 = vpop.xlane.xlu0 %856 }
 0x405   : > { %v858_v15 = vmax.f32 %v854_v13, %v857_v14 }
 0x407   : > { %v859_v16 = vsub.f32 %v854_v13, %v858_v15  ;;  %932 = vst.msk [vmem:[#allocation3] sm:$0xff] %vm650_vm3, %v858_v15  ;;  %864 = vperm.xlu1 %1446, %v858_v15  }
 0x409   : > { %v860_v24 = vmul.f32 1.442695, %v859_v16 }
 0x482   : > { %v865_v17 = vpop.permute.xlu1 %864 }
 0x483   : > { %v867_v18 = vsub.f32 %v848_v7, %v865_v17 }
 0x485   : > { %v868_v19 = vmul.f32 1.442695, %v867_v18 }
 0x487   : > { %1460 = vpow2.f32 %v868_v19 }
 0x488   : > { %1462 = vpow2.f32 %v860_v24 }
 0x494   : > { %v1461_v20 = vpop.eup %1460 }
 0x495   : > { %v872_v21 = vsel %vm658_vm0, %v1461_v20, 0.0  ;;  %v885_v22 = vpack.c.bf16 %v1461_v20, %v1461_v20  ;;  %v1463_v25 = vpop.eup %1462 }
 0x496   : > { %873 = vadd.xlane.f32.xlu0 %v872_v21  ;;  %v871_v28 = vmul.f32 %v1463_v25, %v870_v27 }
 0x497   : > { %1289 = vmatmul.mubr.msk.bf16.vlgmr.msra.gmra.mxu1 %vm658_vm0, %v885_v22 }
 0x4ac   : > { %881 = vperm.xlu0 %1447, %v1463_v25  }
 0x51f   : > { %v874_v29 = vpop.xlane.xlu0 %873 }
 0x520   : > { %v875_v30 = vadd.f32 %v874_v29, %v871_v28 }
 0x522   : > { %877 = vst.msk [vmem:[#allocation4] sm:$0xff] %vm650_vm3, %v875_v30 }
 0x527   : > { %v882_v35 = vpop.permute.xlu0 %881 }
 0x528   : > { %v884_v23 = vmul.f32 %v882_v35, %v878_v34 }
 0x529   : > { %v936_v31 = vld [vmem:[#allocation4] sm:$0xff] }
 0x52a   : > { %1464 = vrcp.f32 %v936_v31 }
 0x537   : > { %v1465_v33 = vpop.eup %1464 }
 0x538   : > { %941 = vperm.xlu1 %1446, %v1465_v33  }
 0x557   : > { %v924_v36 = vpop.f32.mrf.mxu1 }
 0x558   : > { %v930_v37 = vadd.f32 %v924_v36, %v884_v23 }
 0x559   : > { %v1290_v38 = vpop.f32.mrf.mxu1 }
 0x55a   : > { %931 = vst.msk [vmem:[#allocation5] sm:$0xff] %vm560_vm1, %v930_v37 }
 0x55b   : > { %v927_v39 = vpop.f32.mrf.mxu1 }
 0x55d   : > { %v1291_v40 = vpop.f32.mrf.mxu1 }
 0x561   : > { %v938_v41 = vld [vmem:[#allocation5] sm:$0xff] }
 0x5b3   : > { %v942_v42 = vpop.permute.xlu1 %941 }
 0x5b4   : > { %v944_v43 = vmul.f32 %v942_v42, %v938_v41 }
 0x5b6   : > { %v945_v44 = vpack.c.bf16 %v944_v43, %v944_v43 }
 0x5b8   : > { %1297 = vmatmul.mubr.msk.bf16.vlgmr.msra.gmra.mxu0 %vm560_vm1, %v945_v44 }
 0x678   : > { %v1006_v46 = vpop.f32.mrf.mxu0 }
 0x679   : > { %v1007_v47 = vadd.f32 %v1237_v45, %v1006_v46 }
 0x67a   : > { %v1298_v48 = vpop.f32.mrf.mxu0 }
 0x67b   : > { %1012 = vst.msk [vmem:[%s550_s13] sm:$0xff] %vm560_vm1, %v1007_v47 }
 0x67c   : > { %v1009_v49 = vpop.f32.mrf.mxu0 }
 0x67d   : > { %1717 = shalt.err (!%p1714_p4)
}
 0x67e   : > { %s1718_s21 = scalar_lea.hbm %s2162_s0, 128  ;;  %s1722_s12 = scalar_lea.hbm %s2222_s11, 256 }
 0x67f   : > { %p1719_p13 = scmp.ne.s32.totalorder %s2162_s0, %s1718_s21  ;;  %p1723_p6 = scmp.lt.s32.totalorder %s2162_s0, %s2222_s11 }
 0x680   : > { %p1724_p10 = scmp.lt.s32.totalorder %s1722_s12, %s1718_s21 }
 0x681   : > { %p1720_p2 = pnand %p1719_p13, %p2028_p0 }
 0x682   : > { %p1725_p11 = por %p1724_p10, %p1723_p6 }
 0x683   : > { %p1721_p9 = pneg %p1720_p2 }
 0x685   : > { %p1726_p12 = pnand %p1725_p11, %p1721_p9 }
 0x687   : > { %1729 = shalt.err (!%p1726_p12)
}
 0x688   : > { %1332 = dma.vmem_to_hbm [thread:$0]  (%p2028_p0), %s2164_s4, 128, %s2162_s0, %s1014_s20   ;;  %v1299_v50 = vpop.f32.mrf.mxu0 }
 0x689 PF: > { %s1039_s14 = sand.u32 1, %s1784_s17   ;;  %p2270_p1 = scmp.ge.s32.totalorder %s1804_s22, 2 }
 0x68a   : > { %s1040_s16 = scalar_lea.sflag [#allocation8], %s1039_s14 }
 0x68b   : > { %p1364_p3 = pnand %p2270_p1, %p2036_p5 }
 0x68d   : > { %p1365_p8 = pneg %p1364_p3 }
 0x68f   : > { %1779 = dma.done.wait (%p1365_p8), %s1040_s16, 128  }
 0x690   : > { %1781 = vsyncadd (%p1365_p8), %s1040_s16, 4294967168  ;;  %s33_s22 = sadd.s32 1, %s1804_s22   ;;  %s2271_s2 = sld [smem:[#allocation31_spill]] }
 0x691   : > { %p30_p7 = scmp.ge.s32.totalorder %s33_s22, 4   ;;  %s2272_s20 = sld [smem:[#allocation29_spill]] }
 0x692   : > { %s2273_s21 = sld [smem:[#allocation30_spill]]  ;;  %s2274_s17 = smov %s1788_s18 }
 0x693   : > { %s2275_s18 = smov %s1792_s19  ;;  %32 = sbr.rel (!%p30_p7) target bundleno = 20 (0x14), region = 158 }
 0x696   : > { %s2276_s19 = smov %s2271_s2 }
 0x698   :  { %1045 = vsyncpa [#allocation7], 1 }
 0x699   :  { %1047 = vsyncpa [#allocation7 + $0x1], 1 }
 0x69a   :  { %1048 = vsyncpa [#allocation10], 1 }
 0x69b   :  { %1050 = vsyncpa [#allocation10 + $0x1], 1 }
 0x69c   :  { %1051 = vsyncpa [#allocation13], 1 }
 0x69d   :  { %1052 = vsyncpa [#allocation16], 1 }
 0x69e   :  { %1053 = vsyncpa [#allocation19], 1 }
 0x69f   :  { %1054 = vsyncpa [#allocation8], 1 }
 0x6a0   :  { %1056 = vsyncpa [#allocation8 + $0x1], 1 }

// kernel: tpu_custom_call.1
= control target key start
LH: loop header
LB: loop body
LE: loop exit
PB: predicated region body
PF: predicated region fallthrough
CT: control target
= control target key end

     0   :  { %s2211_s0 = inlined_call_operand.hbm [shape: f32[2,8,32], index: 0, kind: input, shape index: {}]   ;;  %s2212_s1 = inlined_call_operand.hbm [shape: f32[2,16,16], index: 1, kind: input, shape index: {}]   ;;  %s2213_s2 = inlined_call_operand.hbm [shape: f32[1,32], index: 2, kind: input, shape index: {}]   ;;  %s2214_s3 = inlined_call_operand.hbm [shape: f32[1,32], index: 3, kind: input, shape index: {}]   ;;  %s2215_s4 = inlined_call_operand.hbm [shape: f32[1,16], index: 4, kind: input, shape index: {}]   ;;  %s2216_s5 = inlined_call_operand.hbm [shape: f32[1,16], index: 5, kind: input, shape index: {}]   ;;  %s2217_s6 = inlined_call_operand.hbm [shape: bf16[32,32], index: 6, kind: input, shape index: {}]   ;;  %s2218_s7 = inlined_call_operand.hbm [shape: bf16[16,32], index: 7, kind: input, shape index: {}]   ;;  %s2219_s8 = inlined_call_operand.hbm [shape: bf16[16,32], index: 8, kind: input, shape index: {}]   ;;  %s2220_s9 = inlined_call_operand.vmem [shape: bf16[32,32], index: 9, kind: input, shape index: {}]   ;;  %s2221_s10 = inlined_call_operand.vmem [shape: f32[1,32], index: 10, kind: input, shape index: {}]   ;;  %s2222_s11 = inlined_call_operand.hbm [shape: f32[2,8,32], index: 11, kind: output, shape index: {}]  }
   0x1   :  { %2231 = sst [smem:[#allocation32_spill]] %s2211_s0 }
   0x2   :  { %2232 = sst [smem:[#allocation33_spill]] %s2213_s2 }
   0x3   :  { %2233 = sst [smem:[#allocation34_spill]] %s2214_s3 }
   0x4   :  { %2234 = sst [smem:[#allocation35_spill]] %s2215_s4 }
   0x5   :  { %2235 = sst [smem:[#allocation36_spill]] %s2216_s5 }
   0x6   :  { %2236 = sst [smem:[#allocation37_spill]] %s2217_s6 }
   0x7   :  { %2237 = sst [smem:[#allocation38_spill]] %s2218_s7 }
   0x8   :  { %2238 = sst [smem:[#allocation39_spill]] %s2219_s8 }
   0x9   :  { %16 = vsyncpa [#allocation7], 0 }
   0xa   :  { %18 = vsyncpa [#allocation7 + $0x1], 0 }
   0xb   :  { %19 = vsyncpa [#allocation10], 0 }
   0xc   :  { %21 = vsyncpa [#allocation10 + $0x1], 0 }
   0xd   :  { %22 = vsyncpa [#allocation13], 0 }
   0xe   :  { %23 = vsyncpa [#allocation16], 0 }
   0xf   :  { %24 = vsyncpa [#allocation19], 0 }
  0x10   :  { %25 = vsyncpa [#allocation8], 0 }
  0x11   :  { %27 = vsyncpa [#allocation8 + $0x1], 0  ;;  %s1884_s17 = smov 0   ;;  %s1886_s18 = smov 0  }
  0x12   :  { %s1888_s19 = smov 0   ;;  %s1890_s20 = smov 0  }
  0x13   :  { %s1892_s21 = smov 0   ;;  %s1894_s22 = smov 0  }
  0x14 LB: > { %2239 = sst [smem:[#allocation29_spill]] %s1800_s21  ;;  %s1915_s23 = sadd.s32 4294967295, %s1804_s22   ;;  %s1804_s22 = sphi %s1894_s22, %s33_s22   ;;  %s1800_s21 = sphi %s1892_s21, %s2273_s21   ;;  %s1796_s20 = sphi %s1890_s20, %s2272_s20   ;;  %s1792_s19 = sphi %s1888_s19, %s2276_s19   ;;  %s1788_s18 = sphi %s1886_s18, %s2275_s18   ;;  %s1784_s17 = sphi %s1884_s17, %s2274_s17  }
  0x15   : > { %p1199_p0 = scmp.ge.s32.totalorder %s1804_s22, 1  ;;  %p2223_p1 = scmp.eq.s32.totalorder %s1915_s23, 0 }
  0x16   : > { %p319_p2 = scmp.lt.s32.totalorder %s1804_s22, 3  ;;  %s1806_s25 = smov [#allocation11]  }
  0x17   : > { %s332_s26 = sshll.u32 %s1806_s25, 4  ;;  %s1807_s27 = smov [#allocation12]   ;;  %s333_s26 = int_to_ptr.vmem [resolvable:$true] %s332_s26 }
  0x18   : > { %p1920_p3 = pnand %p1199_p0, %p319_p2  ;;  %s343_s28 = sshll.u32 %s1807_s27, 4  ;;  %s344_s28 = int_to_ptr.vmem [resolvable:$true] %s343_s28 }
  0x19   : > { %s1808_s30 = smov [#allocation15]   ;;  %s1477_s14 = scalar_lea.vmem %s333_s26, 16 }
  0x1a   : > { %s2240_s24 = scalar_select %p1920_p3, 1, 0 }
  0x1b   : > { %p1334_p5 = pneg %p1920_p3  ;;  %s365_s12 = sshll.u32 %s1808_s30, 4  ;;  %s1933_s12 = int_to_ptr.vmem [resolvable:$true] %s365_s12 }
  0x1c   : > { %p1478_p8 = scmp.ne.s32.totalorder %s333_s26, %s1477_s14  ;;  %s1484_s15 = scalar_lea.vmem %s333_s26, 32 }
  0x1d   : > { %p1929_p6 = pnand %p1334_p5, %p2223_p1  ;;  %p1485_p11 = scmp.lt.s32.totalorder %s333_s26, %s333_s26 }
  0x1e   : > { %p1486_p12 = scmp.lt.s32.totalorder %s1484_s15, %s1477_s14 }
  0x1f   : > { %p1937_p7 = pneg %p1929_p6 }
  0x20   : > { %p1487_p13 = por %p1486_p12, %p1485_p11 }
  0x21   : > { %p1480_p9 = pnand %p1478_p8, %p1937_p7 }
  0x23   : > { %p1481_p10 = pneg %p1480_p9 }
  0x25   : > { %p1488_p0 = pnand %p1487_p13, %p1481_p10 }
  0x27   : > { %1491 = shalt.err (!%p1488_p0)
}
  0x28   : > { %s2243_s2 = sld [smem:[#allocation33_spill]]  ;;  %s1503_s27 = scalar_lea.vmem %s344_s28, 16 }
  0x29   : > { %p1504_p2 = scmp.ne.s32.totalorder %s344_s28, %s1503_s27  ;;  %s1510_s30 = scalar_lea.vmem %s344_s28, 32 }
  0x2a   : > { %p1511_p8 = scmp.lt.s32.totalorder %s344_s28, %s344_s28  ;;  %p1512_p9 = scmp.lt.s32.totalorder %s1510_s30, %s1503_s27 }
  0x2b   : > { %p1506_p5 = pnand %p1504_p2, %p1937_p7 }
  0x2c   : > { %p1513_p1 = por %p1512_p9, %p1511_p8 }
  0x2d   : > { %p1507_p4 = pneg %p1506_p5 }
  0x2e   : > { %1337 = dma.hbm_to_vmem [thread:$0]  (!%p1929_p6), %s2243_s2, 16, %s333_s26, [#allocation10]  }
  0x2f   : > { %p1514_p3 = pnand %p1513_p1, %p1507_p4 }
  0x31   : > { %1517 = shalt.err (!%p1514_p3)
}
  0x32   : > { %s2244_s3 = sld [smem:[#allocation34_spill]]  ;;  %s1529_s26 = scalar_lea.vmem %s1933_s12, 16 }
  0x33   : > { %p1530_p10 = scmp.ne.s32.totalorder %s1933_s12, %s1529_s26  ;;  %s1536_s16 = scalar_lea.vmem %s1933_s12, 32 }
  0x34   : > { %p1537_p1 = scmp.lt.s32.totalorder %s1933_s12, %s1933_s12  ;;  %p1538_p3 = scmp.lt.s32.totalorder %s1536_s16, %s1529_s26 }
  0x35   : > { %p1532_p11 = pnand %p1530_p10, %p1937_p7 }
  0x36   : > { %p1539_p4 = por %p1538_p3, %p1537_p1 }
  0x37   : > { %p1533_p12 = pneg %p1532_p11 }
  0x38   : > { %1340 = dma.hbm_to_vmem [thread:$0]  (!%p1929_p6), %s2244_s3, 16, %s344_s28, [#allocation13]  }
  0x39   : > { %p1540_p13 = pnand %p1539_p4, %p1533_p12 }
  0x3b   : > { %1543 = shalt.err (!%p1540_p13)
}
  0x3c   : > { %s2245_s5 = sld [smem:[#allocation36_spill]]  ;;  %s1809_s28 = smov [#allocation18]  }
  0x3d   : > { %s388_s30 = sshll.u32 %s1809_s28, 4  ;;  %s1810_s14 = smov [#allocation14]   ;;  %s389_s30 = int_to_ptr.vmem [resolvable:$true] %s388_s30 }
  0x3e   : > { %s354_s15 = sshll.u32 %s1810_s14, 4  ;;  %s1555_s2 = scalar_lea.vmem %s389_s30, 128  ;;  %s355_s15 = int_to_ptr.vmem [resolvable:$true] %s354_s15 }
  0x3f   : > { %p1556_p0 = scmp.ne.s32.totalorder %s389_s30, %s1555_s2  ;;  %p1563_p8 = scmp.lt.s32.totalorder %s389_s30, %s389_s30 }
  0x40   : > { %p1564_p9 = scmp.lt.s32.totalorder %s1555_s2, %s1555_s2 }
  0x41   : > { %p1558_p2 = pnand %p1556_p0, %p1937_p7 }
  0x42   : > { %1346 = dma.hbm_to_vmem [thread:$0]  (!%p1929_p6), %s2245_s5, 16, %s1933_s12, [#allocation16]  }
  0x43   : > { %p1559_p5 = pneg %p1558_p2  ;;  %p1565_p10 = por %p1564_p9, %p1563_p8 }
  0x45   : > { %p1566_p11 = pnand %p1565_p10, %p1559_p5 }
  0x47   : > { %1569 = shalt.err (!%p1566_p11)
}
  0x48   : > { %s2225_s26 = smov 64   ;;  %s2227_s16 = smov 4  }
  0x49   : > { %s2246_s7 = sld [smem:[#allocation38_spill]]  ;;  %s1581_s27 = scalar_lea.vmem %s355_s15, 16 }
  0x4a   : > { %p1582_p12 = scmp.ne.s32.totalorder %s355_s15, %s1581_s27  ;;  %s1588_s2 = scalar_lea.vmem %s355_s15, 32 }
  0x4b   : > { %p1589_p4 = scmp.lt.s32.totalorder %s355_s15, %s355_s15  ;;  %p1590_p13 = scmp.lt.s32.totalorder %s1588_s2, %s1581_s27 }
  0x4c   : > { %p1584_p1 = pnand %p1582_p12, %p1937_p7 }
  0x4d   : > { %p1591_p0 = por %p1590_p13, %p1589_p4 }
  0x4e   : > { %p1585_p3 = pneg %p1584_p1 }
  0x4f   : > { %1352 = dma.hbm_to_vmem [thread:$0]  (!%p1929_p6), %s2246_s7, 128, %s389_s30, [#allocation19], %s2225_s26, %s2225_s26, %s2227_s16  }
  0x50   : > { %p1592_p2 = pnand %p1591_p0, %p1585_p3 }
  0x52   : > { %1595 = shalt.err (!%p1592_p2)
}
  0x53   : > { %s2247_s4 = sld [smem:[#allocation35_spill]]  ;;  %s1813_s30 = smov [#allocation17]  }
  0x54   : > { %s375_s12 = sshll.u32 %s1813_s30, 4  ;;  %s1814_s25 = smov [#allocation20]   ;;  %s376_s12 = int_to_ptr.vmem [resolvable:$true] %s375_s12 }
  0x55   : > { %s401_s26 = sshll.u32 %s1814_s25, 4  ;;  %s1607_s16 = scalar_lea.vmem %s376_s12, 256  ;;  %s402_s26 = int_to_ptr.vmem [resolvable:$true] %s401_s26 }
  0x56   : > { %p1608_p5 = scmp.ne.s32.totalorder %s376_s12, %s1607_s16  ;;  %p1615_p10 = scmp.lt.s32.totalorder %s376_s12, %s376_s12 }
  0x57   : > { %p1616_p11 = scmp.lt.s32.totalorder %s1607_s16, %s1607_s16 }
  0x58   : > { %p1610_p8 = pnand %p1608_p5, %p1937_p7 }
  0x59   : > { %1343 = dma.hbm_to_vmem [thread:$0]  (!%p1929_p6), %s2247_s4, 16, %s355_s15, [#allocation13]  }
  0x5a   : > { %p1611_p9 = pneg %p1610_p8  ;;  %p1617_p12 = por %p1616_p11, %p1615_p10 }
  0x5c   : > { %p1618_p1 = pnand %p1617_p12, %p1611_p9 }
  0x5e   : > { %1621 = shalt.err (!%p1618_p1)
}
  0x5f   : > { %s2248_s27 = smov 4   ;;  %s2249_s2 = smov 64  }
  0x60   : > { %s2250_s6 = sld [smem:[#allocation37_spill]]  ;;  %s1633_s14 = scalar_lea.vmem %s402_s26, 128 }
  0x61   : > { %p1634_p3 = scmp.ne.s32.totalorder %s402_s26, %s1633_s14  ;;  %p1641_p0 = scmp.lt.s32.totalorder %s402_s26, %s402_s26 }
  0x62   : > { %p1642_p2 = scmp.lt.s32.totalorder %s1633_s14, %s1633_s14 }
  0x63   : > { %p1636_p4 = pnand %p1634_p3, %p1937_p7 }
  0x64   : > { %p1643_p5 = por %p1642_p2, %p1641_p0 }
  0x65   : > { %p1637_p13 = pneg %p1636_p4 }
  0x66   : > { %1349 = dma.hbm_to_vmem [thread:$0]  (!%p1929_p6), %s2250_s6, 256, %s376_s12, [#allocation16], %s2249_s2, %s2249_s2, %s2248_s27  }
  0x67   : > { %p1644_p8 = pnand %p1643_p5, %p1637_p13 }
  0x69   : > { %1647 = shalt.err (!%p1644_p8)
}
  0x6a   : > { %s2251_s8 = sld [smem:[#allocation39_spill]]  ;;  %s1198_s29 = sadd.s32 4294967294, %s1804_s22  }
  0x6b   : > { %s45_s13 = sadd.s32 1, %s1800_s21  ;;  %s52_s12 = sadd.s32 1, %s1792_s19 }
  0x6c   : > { %p47_p7 = scmp.ge.s32.totalorder %s45_s13, 2  ;;  %p59_p9 = scmp.ne.s32.totalorder %s1792_s19, %s1788_s18 }
  0x6d   : > { %p60_p10 = scmp.eq.s32.totalorder %s1804_s22, 0  ;;  %p65_p11 = scmp.ne.s32.totalorder %s1788_s18, %s1784_s17 }
  0x6e   : > { %s2278_s13 = smov (%p47_p7, %s45_s13), 0  ;;  %p2254_p1 = scmp.eq.s32.totalorder %s1915_s23, 0 }
  0x6f   : > { %2252 = sst [smem:[#allocation30_spill]] %s2278_s13  ;;  %p2015_p12 = por %p60_p10, %p59_p9 }
  0x70   : > { %1355 = dma.hbm_to_vmem [thread:$0]  (!%p1929_p6), %s2251_s8, 128, %s402_s26, [#allocation19], %s2249_s2, %s2249_s2, %s2248_s27  }
  0x71   : > { %p2021_p6 = por %p2254_p1, %p65_p11  ;;  %s49_s27 = ssub.s32 %s1800_s21, %s2278_s13 }
  0x72   : > { %p306_p3 = scmp.eq.s32.totalorder %s1915_s23, 1  ;;  %p50_p4 = scmp.eq.s32.totalorder %s49_s27, 0 }
  0x73   : > { %p312_p13 = scmp.eq.s32.totalorder %s1198_s29, 1  ;;  %p1374_p2 = scmp.lt.s32.totalorder %s1804_s22, 2 }
  0x74   : > { %p2028_p0 = por %p306_p3, %p59_p9  ;;  %s421_s14 = sand.u32 1, %s1792_s19  }
  0x75   : > { %s2034_s15 = scalar_select %p50_p4, %s1792_s19, %s52_s12  }
  0x76   : > { %p2036_p5 = por %p312_p13, %p65_p11  ;;  %s1208_s16 = sshll.u32 %s421_s14, 3 }
  0x77   : > { %2257 = sst [smem:[#allocation31_spill]] %s2034_s15  ;;  %s1209_s30 = sshll.u32 %s1800_s21, 7 }
  0x78   : > { %s2259_s0 = sld [smem:[#allocation32_spill]]  ;;  %s425_s27 = scalar_lea.vmem [#allocation6], %s1208_s16 }
  0x79   : > { %s432_s29 = sshll.u32 %s425_s27, 4  ;;  %p2047_p8 = pnand %p1374_p2, %p2015_p12  ;;  %s433_s29 = int_to_ptr.vmem [resolvable:$true] %s432_s29 }
  0x7a   : > { %s1210_s12 = sshll.u32 %s421_s14, 4  ;;  %s1245_s7 = sshll.u32 %s1800_s21, 8 }
  0x7b   : > { %s422_s8 = scalar_lea.sflag [#allocation7], %s421_s14  ;;  %p1650_p7 = pneg %p2047_p8 }
  0x7c   : > { %s1661_s13 = scalar_lea.vmem %s433_s29, 128  ;;  %s1815_s3 = smov [#allocation6]  }
  0x7d   : > { %p1662_p9 = scmp.ne.s32.totalorder %s433_s29, %s1661_s13  ;;  %s1666_s4 = sshll.u32 %s1815_s3, 4  ;;  %s1667_s4 = int_to_ptr.vmem [resolvable:$false] %s1666_s4 }
  0x7e   : > { %s430_s5 = scalar_lea.hbm %s2259_s0, %s1209_s30  ;;  %s1668_s25 = scalar_lea.vmem %s1667_s4, 256 }
  0x7f   : > { %p1664_p10 = pnand %p1662_p9, %p1650_p7  ;;  %p1669_p12 = scmp.lt.s32.totalorder %s433_s29, %s1667_s4 }
  0x80   : > { %p1670_p1 = scmp.lt.s32.totalorder %s1668_s25, %s1661_s13 }
  0x81   : > { %p1665_p11 = pneg %p1664_p10 }
  0x82   : > { %p1671_p3 = por %p1670_p1, %p1669_p12 }
  0x84   : > { %p1672_p4 = pnand %p1671_p3, %p1665_p11 }
  0x86   : > { %1675 = shalt.err (!%p1672_p4)
}
  0x87   : > { %1359 = dma.hbm_to_vmem [thread:$0]  (!%p2047_p8), %s430_s5, 128, %s433_s29, %s422_s8  }
  0x88   : > { %s443_s14 = scalar_lea.vmem [#allocation9], %s1210_s12  ;;  %s439_s30 = sand.u32 1, %s1804_s22  }
  0x89   : > { %s452_s16 = sshll.u32 %s443_s14, 4  ;;  %s451_s3 = scalar_lea.hbm %s2212_s1, %s1245_s7  ;;  %s453_s16 = int_to_ptr.vmem [resolvable:$true] %s452_s16 }
  0x8a   : > { %s440_s21 = scalar_lea.sflag [#allocation10], %s439_s30  ;;  %s1689_s15 = scalar_lea.vmem %s453_s16, 256 }
  0x8b   : > { %p1690_p13 = scmp.ne.s32.totalorder %s453_s16, %s1689_s15  ;;  %s1816_s13 = smov [#allocation9]  }
  0x8c   : > { %s1694_s4 = sshll.u32 %s1816_s13, 4  ;;  %s1695_s4 = int_to_ptr.vmem [resolvable:$false] %s1694_s4 }
  0x8d   : > { %p1692_p2 = pnand %p1690_p13, %p1650_p7  ;;  %s1696_s25 = scalar_lea.vmem %s1695_s4, 512 }
  0x8e   : > { %p1697_p10 = scmp.lt.s32.totalorder %s453_s16, %s1695_s4  ;;  %p1698_p11 = scmp.lt.s32.totalorder %s1696_s25, %s1689_s15 }
  0x8f   : > { %p1693_p9 = pneg %p1692_p2 }
  0x90   : > { %p1699_p12 = por %p1698_p11, %p1697_p10 }
  0x92   : > { %p1700_p1 = pnand %p1699_p12, %p1693_p9 }
  0x94   : > { %1703 = shalt.err (!%p1700_p1)
}
  0x95   : > { %s1817_s5 = smov 128   ;;  %s1818_s0 = smov 8  }
  0x96   : > { %1362 = dma.hbm_to_vmem [thread:$0]  (!%p2047_p8), %s451_s3, 256, %s453_s16, %s440_s21, %s1817_s5, %s1817_s5, %s1818_s0  }
  0x97   : > { %p2261_p3 = scmp.ne.s32.totalorder %s2240_s24, 0 }
  0x98   : > { %s2071_s7 = sand.u32 (!%p2261_p3), 1, %s1788_s18  }
  0x99   : > { %464 = sbr.rel (%p2261_p3) target bundleno = 1673 (0x689), region = 64  ;;  %s1214_s8 = sshll.u32 (!%p2261_p3), %s2071_s7, 3 }
  0x9a   : > { %s467_s15 = scalar_lea.sflag (!%p2261_p3), [#allocation7], %s2071_s7  ;;  %s470_s29 = scalar_lea.vmem (!%p2261_p3), [#allocation6], %s1214_s8 }
  0x9e   : > { %1755 = dma.done.wait (%p2021_p6), %s467_s15, 128  }
  0x9f   : > { %1757 = vsyncadd (%p2021_p6), %s467_s15, 4294967168  ;;  %s475_s6 = sand.u32 1, %s1915_s23   ;;  %s1215_s21 = sshll.u32 %s2071_s7, 4 }
  0xa0   : > { %s476_s24 = scalar_lea.sflag [#allocation10], %s475_s6  ;;  %s479_s12 = scalar_lea.vmem [#allocation9], %s1215_s21 }
  0xa1   : > { %1759 = dma.done.wait (%p2021_p6), %s476_s24, 256  }
  0xa2   : > { %1761 = vsyncadd (%p2021_p6), %s476_s24, 4294967040  ;;  %p2262_p8 = scmp.eq.s32.totalorder %s1915_s23, 0 }
  0xa4   : > { %1763 = dma.done.wait (%p2262_p8), [#allocation10], 16   ;;  %p2263_p7 = pmov %p2262_p8 }
  0xa6   : > { %1765 = vsyncadd (%p2263_p7), [#allocation10], 4294967280  ;;  %p2264_p4 = pmov %p2263_p7 }
  0xa8   : > { %1767 = dma.done.wait (%p2264_p4), [#allocation13], 32   ;;  %p2265_p13 = pmov %p2264_p4 }
  0xa9   : > { %p2266_p2 = pmov %p2264_p4 }
  0xaa   : > { %1769 = vsyncadd (%p2265_p13), [#allocation13], 4294967264 }
  0xab   : > { %1771 = dma.done.wait (%p2266_p2), [#allocation16], 272   ;;  %p2267_p9 = pmov %p2266_p2 }
  0xac   : > { %p2268_p6 = pmov %p2266_p2 }
  0xad   : > { %1773 = vsyncadd (%p2267_p9), [#allocation16], 4294967024 }
  0xae   : > { %1775 = dma.done.wait (%p2268_p6), [#allocation19], 256   ;;  %p2269_p10 = pmov %p2266_p2 }
  0xaf   : > { %vm658_vm0 = vcmask 130048   ;;  %vm560_vm1 = vcmask 261120   ;;  %v654_v0 = vld [vmem:[%s479_s12] sm:$0xff]  ;;  %v655_v1 = vld [vmem:[%s479_s12 + $0x8] sm:$0xff]  ;;  %v1819_v23 = vmov 0.0   ;;  %vm1820_vm2 = vmmov 0  }
  0xb0   : > { %1777 = vsyncadd (%p2269_p10), [#allocation19], 4294967040  ;;  %v557_v2 = vld [vmem:[%s470_s29] sm:$0xff]  ;;  %v659_v3 = vsel %vm658_vm0, %v654_v0, 0.0  ;;  %v662_v4 = vsel %vm658_vm0, %v655_v1, 0.0  ;;  %1260 = vmatprep.subr.bf16.mxu0 %v1819_v23  ;;  %653 = vst.msk [vmem:[#allocation5] sm:$0xff] %vm560_vm1, %v1819_v23  ;;  %1268 = vmatprep.subr.bf16.mxu1 %v1819_v23 }
  0xb1   : > { %v561_v5 = vsel %vm560_vm1, %v557_v2, 0.0  ;;  %660 = vadd.xlane.f32.xlu0 %v659_v3  ;;  %v1448_v21 = vld [vmem:[#allocation17 + $0x8] sm:$0xff]   ;;  %v1450_v22 = vld [vmem:[#allocation18] sm:$0xff]   ;;  %v1449_v24 = vld [vmem:[#allocation17] sm:$0xff]   ;;  %1264 = vmatprep.mubr.msk.bf16.mxu0 %vm1820_vm2, %v1819_v23  ;;  %vm650_vm3 = vcmask 7168   ;;  %s1242_s3 = sshll.u32 %s1796_s20, 7 }
  0xb2   : > { %562 = vadd.xlane.f32.xlu1 %v561_v5  ;;  %1261 = vmatpush3.bf16.msra.mxu0 %v1448_v21  ;;  %v1229_v36 = vld [vmem:[#allocation14] ss:$0 sm:$0xff]  ;;  %v1224_v39 = vld [vmem:[#allocation11] ss:$0 sm:$0xff]  ;;  %v1230_v43 = vld [vmem:[#allocation15] ss:$0 sm:$0xff]  ;;  %s2162_s0 = scalar_lea.hbm %s2222_s11, %s1242_s3 }
  0xb3   : > { %1269 = vmatpush3.bf16.msra.mxu1 %v1450_v22  ;;  %1262 = vmatprep.subr.bf16.mxu0 %v1819_v23  ;;  %v1225_v44 = vld [vmem:[#allocation12] ss:$0 sm:$0xff]  ;;  %652 = vst.msk [vmem:[#allocation4] sm:$0xff] %vm650_vm3, %v1819_v23  ;;  %s550_s13 = scalar_lea.vmem [#allocation21], %s1214_s8  ;;  %s1014_s20 = scalar_lea.sflag [#allocation8], %s2071_s7 }
  0xb4   : > { %1270 = vmatprep.mubr.msk.bf16.mxu1 %vm1820_vm2, %v1819_v23  ;;  %1274 = vmatprep.subr.bf16.mxu1 %v1819_v23  ;;  %v1451_v50 = vld [vmem:[#allocation20] sm:$0xff]   ;;  %s1027_s4 = sshll.u32 %s550_s13, 4  ;;  %s1823_s8 = smov [#allocation21]   ;;  %s2164_s4 = int_to_ptr.vmem [resolvable:$true] %s1027_s4 }
  0xb5   : > { %663 = vadd.xlane.f32.xlu0 %v662_v4  ;;  %s1704_s15 = scalar_lea.vmem %s2164_s4, 128  ;;  %s1708_s29 = sshll.u32 %s1823_s8, 4  ;;  %s1709_s29 = int_to_ptr.vmem [resolvable:$false] %s1708_s29 }
  0xb6   : > { %1263 = vmatpush3.bf16.msra.mxu0 %v1449_v24  ;;  %p1705_p11 = scmp.ne.s32.totalorder %s2164_s4, %s1704_s15  ;;  %s1710_s6 = scalar_lea.vmem %s1709_s29, 256 }
  0xb7   : > { %1280 = vmatprep.subr.bf16.mxu0 %v1819_v23  ;;  %p1711_p3 = scmp.lt.s32.totalorder %s2164_s4, %s1709_s29  ;;  %p1712_p8 = scmp.lt.s32.totalorder %s1710_s6, %s1704_s15 }
  0xb8   : > { %p1706_p12 = pnand %p1705_p11, %p2028_p0 }
  0xb9   : > { %p1713_p7 = por %p1712_p8, %p1711_p3 }
  0xba   : > { %p1707_p1 = pneg %p1706_p12 }
  0xbc   : > { %p1714_p4 = pnand %p1713_p7, %p1707_p1 }
 0x13a   : > { %v661_v6 = vpop.xlane.xlu0 %660 }
 0x13b   : > { %v563_v7 = vpop.xlane.xlu1 %562  ;;  %v666_v8 = vmul.f32 0.0625, %v661_v6  ;;  %v1821_v6 = vmov -inf  }
 0x13c   : > { %v565_v9 = vmul.f32 0.03125, %v563_v7  ;;  %651 = vst.msk [vmem:[#allocation3] sm:$0xff] %vm650_vm3, %v1821_v6 }
 0x13d   : > { %v668_v10 = vsub.f32 %v654_v0, %v666_v8 }
 0x13e   : > { %v566_v11 = vsub.f32 %v557_v2, %v565_v9  ;;  %v664_v12 = vpop.xlane.xlu0 %663 }
 0x13f   : > { %v667_v13 = vmul.f32 0.0625, %v664_v12  ;;  %v670_v14 = vmul.f32 %v668_v10, %v668_v10  ;;  %v1822_v12 = vmov 0  }
 0x140   : > { %v567_v15 = vmul.f32 %v566_v11, %v566_v11  ;;  %1446 = vset.pattern.permute.xlu1 %v1822_v12  ;;  %1447 = vset.pattern.permute.xlu0 %v1822_v12 }
 0x141   : > { %v669_v16 = vsub.f32 %v655_v1, %v667_v13  ;;  %v672_v17 = vsel %vm658_vm0, %v670_v14, 0.0 }
 0x142   : > { %673 = vadd.xlane.f32.xlu1 %v672_v17  ;;  %v568_v19 = vsel %vm560_vm1, %v567_v15, 0.0 }
 0x143   : > { %v671_v18 = vmul.f32 %v669_v16, %v669_v16  ;;  %v854_v13 = vld [vmem:[#allocation3] sm:$0xff] }
 0x145   : > { %v675_v20 = vsel %vm658_vm0, %v671_v18, 0.0 }
 0x146   : > { %676 = vadd.xlane.f32.xlu0 %v675_v20  ;;  %569 = vadd.xlane.f32.xlu1 %v568_v19 }
 0x1cb   : > { %v674_v25 = vpop.xlane.xlu1 %673 }
 0x1cc   : > { %v678_v26 = vmul.f32 0.0625, %v674_v25 }
 0x1ce   : > { %v680_v27 = vadd.f32 1e-05, %v678_v26  ;;  %v1452_v26 = vld [vmem:[%s2220_s9 + $0x8] sm:$0xff]  }
 0x1cf   : > { %v677_v28 = vpop.xlane.xlu0 %676  ;;  %v570_v29 = vpop.xlane.xlu1 %569 }
 0x1d0   : > { %1454 = vrsqrt.f32 %v680_v27  ;;  %v679_v30 = vmul.f32 0.0625, %v677_v28  ;;  %v571_v31 = vmul.f32 0.03125, %v570_v29  ;;  %v870_v27 = vld [vmem:[#allocation4] sm:$0xff] }
 0x1d2   : > { %v681_v32 = vadd.f32 1e-05, %v679_v30  ;;  %v572_v33 = vadd.f32 1e-05, %v571_v31 }
 0x1d4   : > { %1456 = vrsqrt.f32 %v681_v32  ;;  %v1453_v32 = vld [vmem:[%s2220_s9] sm:$0xff]  }
 0x1d5   : > { %1458 = vrsqrt.f32 %v572_v33 }
 0x1dd   : > { %v1455_v34 = vpop.eup %1454 }
 0x1de   : > { %v684_v35 = vmul.f32 %v1455_v34, %v668_v10  ;;  %v878_v34 = vld [vmem:[#allocation5] sm:$0xff] }
 0x1e0   : > { %v692_v41 = vmul.f32 %v1229_v36, %v684_v35 }
 0x1e1   : > { %v1457_v37 = vpop.eup %1456 }
 0x1e2   : > { %v1459_v38 = vpop.eup %1458  ;;  %v685_v40 = vmul.f32 %v1457_v37, %v669_v16  ;;  %v700_v47 = vadd.f32 %v1230_v43, %v692_v41 }
 0x1e3   : > { %v574_v42 = vmul.f32 %v1459_v38, %v566_v11 }
 0x1e4   : > { %v693_v45 = vmul.f32 %v1229_v36, %v685_v40 }
 0x1e5   : > { %v581_v46 = vmul.f32 %v1224_v39, %v574_v42 }
 0x1e6   : > { %v701_v48 = vadd.f32 %v1230_v43, %v693_v45  ;;  %v1237_v45 = vld [vmem:[%s2221_s10] ss:$0 sm:$0xff] }
 0x1e7   : > { %v588_v49 = vadd.f32 %v1225_v44, %v581_v46 }
 0x1e8   : > { %v702_v51 = vpack.c.bf16 %v701_v48, %v700_v47 }
 0x1e9   : > { %v589_v52 = vpack.c.bf16 %v588_v49, %v588_v49 }
 0x1ea   : > { %1271 = vmatmul.mubr.msk.bf16.vlgmr.msra.gmra.mxu1 %vm658_vm0, %v702_v51 }
 0x1eb   : > { %1265 = vmatmul.mubr.msk.bf16.vlgmr.msra.gmra.mxu0 %vm560_vm1, %v589_v52  ;;  %1275 = vmatpush3.bf16.msra.mxu1 %v1451_v50 }
 0x1ec   : > { %1276 = vmatprep.mubr.msk.bf16.mxu1 %vm1820_vm2, %v1819_v23  ;;  %1282 = vmatprep.mubr.msk.bf16.mxu0 %vm1820_vm2, %v1819_v23 }
 0x1ed   : > { %1286 = vmatprep.subr.bf16.mxu1 %v1819_v23 }
 0x1f2   : > { %1277 = vmatmul.mubr.msk.bf16.vlgmr.msra.gmra.mxu1 %vm658_vm0, %v702_v51 }
 0x1f3   : > { %1288 = vmatprep.mubr.msk.bf16.mxu1 %vm1820_vm2, %v1819_v23 }
 0x2aa   : > { %v748_v53 = vpop.f32.mrf.mxu1 }
 0x2ab   : > { %v643_v54 = vpop.f32.mrf.mxu0 }
 0x2ac   : > { %649 = vst.msk [vmem:[#allocation2] sm:$0xff] %vm560_vm1, %v643_v54  ;;  %v1272_v55 = vpop.f32.mrf.mxu1 }
 0x2ad   : > { %v1266_v56 = vpop.f32.mrf.mxu0 }
 0x2ae   : > { %v751_v57 = vpop.f32.mrf.mxu1 }
 0x2af   : > { %v646_v58 = vpop.f32.mrf.mxu0  ;;  %v806_v59 = vpack.c.bf16 %v751_v57, %v748_v53 }
 0x2b0   : > { %v1273_v60 = vpop.f32.mrf.mxu1 }
 0x2b1   : > { %v812_v61 = vsel %vm560_vm1, %v806_v59, 0  ;;  %v1267_v62 = vpop.f32.mrf.mxu0 }
 0x2b2   : > { %v797_v63 = vpop.f32.mrf.mxu1  ;;  %1281 = vmatpush3.bf16.xpose.msra.mxu0 %v812_v61 }
 0x2b3   : > { %1292 = vmatprep.subr.bf16.mxu0 %v1819_v23  ;;  %v804_v1 = vld [vmem:[#allocation2] sm:$0xff] }
 0x2b4   : > { %v1278_v0 = vpop.f32.mrf.mxu1  ;;  %v805_v4 = vpack.c.bf16 %v804_v1, %v804_v1 }
 0x2b6   : > { %v800_v2 = vpop.f32.mrf.mxu1 }
 0x2b7   : > { %v886_v3 = vpack.c.bf16 %v800_v2, %v797_v63 }
 0x2b8   : > { %v1279_v5 = vpop.f32.mrf.mxu1 }
 0x2b9   : > { %1283 = vmatmul.mubr.msk.bf16.vlgmr.msra.gmra.mxu0 %vm560_vm1, %v805_v4  ;;  %1287 = vmatpush3.bf16.msra.mxu1 %v886_v3 }
 0x2ba   : > { %1296 = vmatprep.mubr.msk.bf16.mxu0 %vm1820_vm2, %v1819_v23  ;;  %1293 = vmatpush3.bf16.msra.mxu0 %v1452_v26 }
 0x2bb   : > { %1294 = vmatprep.subr.bf16.mxu0 %v1819_v23 }
 0x2be   : > { %1295 = vmatpush3.bf16.msra.mxu0 %v1453_v32 }
 0x379   : > { %v848_v7 = vpop.f32.mrf.mxu0 }
 0x37a   : > { %v855_v8 = vsel %vm658_vm0, %v848_v7, -inf }
 0x37b   : > { %856 = vmax.xlane.f32.xlu0 %v855_v8  ;;  %v1284_v9 = vpop.f32.mrf.mxu0 }
 0x37d   : > { %v851_v10 = vpop.f32.mrf.mxu0 }
 0x37f   : > { %v1285_v11 = vpop.f32.mrf.mxu0 }
 0x404   : > { %v857_v14 = vpop.xlane.xlu0 %856 }
 0x405   : > { %v858_v15 = vmax.f32 %v854_v13, %v857_v14 }
 0x407   : > { %v859_v16 = vsub.f32 %v854_v13, %v858_v15  ;;  %932 = vst.msk [vmem:[#allocation3] sm:$0xff] %vm650_vm3, %v858_v15  ;;  %864 = vperm.xlu1 %1446, %v858_v15  }
 0x409   : > { %v860_v24 = vmul.f32 1.442695, %v859_v16 }
 0x482   : > { %v865_v17 = vpop.permute.xlu1 %864 }
 0x483   : > { %v867_v18 = vsub.f32 %v848_v7, %v865_v17 }
 0x485   : > { %v868_v19 = vmul.f32 1.442695, %v867_v18 }
 0x487   : > { %1460 = vpow2.f32 %v868_v19 }
 0x488   : > { %1462 = vpow2.f32 %v860_v24 }
 0x494   : > { %v1461_v20 = vpop.eup %1460 }
 0x495   : > { %v872_v21 = vsel %vm658_vm0, %v1461_v20, 0.0  ;;  %v885_v22 = vpack.c.bf16 %v1461_v20, %v1461_v20  ;;  %v1463_v25 = vpop.eup %1462 }
 0x496   : > { %873 = vadd.xlane.f32.xlu0 %v872_v21  ;;  %v871_v28 = vmul.f32 %v1463_v25, %v870_v27 }
 0x497   : > { %1289 = vmatmul.mubr.msk.bf16.vlgmr.msra.gmra.mxu1 %vm658_vm0, %v885_v22 }
 0x4ac   : > { %881 = vperm.xlu0 %1447, %v1463_v25  }
 0x51f   : > { %v874_v29 = vpop.xlane.xlu0 %873 }
 0x520   : > { %v875_v30 = vadd.f32 %v874_v29, %v871_v28 }
 0x522   : > { %877 = vst.msk [vmem:[#allocation4] sm:$0xff] %vm650_vm3, %v875_v30 }
 0x527   : > { %v882_v35 = vpop.permute.xlu0 %881 }
 0x528   : > { %v884_v23 = vmul.f32 %v882_v35, %v878_v34 }
 0x529   : > { %v936_v31 = vld [vmem:[#allocation4] sm:$0xff] }
 0x52a   : > { %1464 = vrcp.f32 %v936_v31 }
 0x537   : > { %v1465_v33 = vpop.eup %1464 }
 0x538   : > { %941 = vperm.xlu1 %1446, %v1465_v33  }
 0x557   : > { %v924_v36 = vpop.f32.mrf.mxu1 }
 0x558   : > { %v930_v37 = vadd.f32 %v924_v36, %v884_v23 }
 0x559   : > { %v1290_v38 = vpop.f32.mrf.mxu1 }
 0x55a   : > { %931 = vst.msk [vmem:[#allocation5] sm:$0xff] %vm560_vm1, %v930_v37 }
 0x55b   : > { %v927_v39 = vpop.f32.mrf.mxu1 }
 0x55d   : > { %v1291_v40 = vpop.f32.mrf.mxu1 }
 0x561   : > { %v938_v41 = vld [vmem:[#allocation5] sm:$0xff] }
 0x5b3   : > { %v942_v42 = vpop.permute.xlu1 %941 }
 0x5b4   : > { %v944_v43 = vmul.f32 %v942_v42, %v938_v41 }
 0x5b6   : > { %v945_v44 = vpack.c.bf16 %v944_v43, %v944_v43 }
 0x5b8   : > { %1297 = vmatmul.mubr.msk.bf16.vlgmr.msra.gmra.mxu0 %vm560_vm1, %v945_v44 }
 0x678   : > { %v1006_v46 = vpop.f32.mrf.mxu0 }
 0x679   : > { %v1007_v47 = vadd.f32 %v1237_v45, %v1006_v46 }
 0x67a   : > { %v1298_v48 = vpop.f32.mrf.mxu0 }
 0x67b   : > { %1012 = vst.msk [vmem:[%s550_s13] sm:$0xff] %vm560_vm1, %v1007_v47 }
 0x67c   : > { %v1009_v49 = vpop.f32.mrf.mxu0 }
 0x67d   : > { %1717 = shalt.err (!%p1714_p4)
}
 0x67e   : > { %s1718_s21 = scalar_lea.hbm %s2162_s0, 128  ;;  %s1722_s12 = scalar_lea.hbm %s2222_s11, 256 }
 0x67f   : > { %p1719_p13 = scmp.ne.s32.totalorder %s2162_s0, %s1718_s21  ;;  %p1723_p6 = scmp.lt.s32.totalorder %s2162_s0, %s2222_s11 }
 0x680   : > { %p1724_p10 = scmp.lt.s32.totalorder %s1722_s12, %s1718_s21 }
 0x681   : > { %p1720_p2 = pnand %p1719_p13, %p2028_p0 }
 0x682   : > { %p1725_p11 = por %p1724_p10, %p1723_p6 }
 0x683   : > { %p1721_p9 = pneg %p1720_p2 }
 0x685   : > { %p1726_p12 = pnand %p1725_p11, %p1721_p9 }
 0x687   : > { %1729 = shalt.err (!%p1726_p12)
}
 0x688   : > { %1332 = dma.vmem_to_hbm [thread:$0]  (%p2028_p0), %s2164_s4, 128, %s2162_s0, %s1014_s20   ;;  %v1299_v50 = vpop.f32.mrf.mxu0 }
 0x689 PF: > { %s1039_s14 = sand.u32 1, %s1784_s17   ;;  %p2270_p1 = scmp.ge.s32.totalorder %s1804_s22, 2 }
 0x68a   : > { %s1040_s16 = scalar_lea.sflag [#allocation8], %s1039_s14 }
 0x68b   : > { %p1364_p3 = pnand %p2270_p1, %p2036_p5 }
 0x68d   : > { %p1365_p8 = pneg %p1364_p3 }
 0x68f   : > { %1779 = dma.done.wait (%p1365_p8), %s1040_s16, 128  }
 0x690   : > { %1781 = vsyncadd (%p1365_p8), %s1040_s16, 4294967168  ;;  %s33_s22 = sadd.s32 1, %s1804_s22   ;;  %s2271_s2 = sld [smem:[#allocation31_spill]] }
 0x691   : > { %p30_p7 = scmp.ge.s32.totalorder %s33_s22, 4   ;;  %s2272_s20 = sld [smem:[#allocation29_spill]] }
 0x692   : > { %s2273_s21 = sld [smem:[#allocation30_spill]]  ;;  %s2274_s17 = smov %s1788_s18 }
 0x693   : > { %s2275_s18 = smov %s1792_s19  ;;  %32 = sbr.rel (!%p30_p7) target bundleno = 20 (0x14), region = 158 }
 0x696   : > { %s2276_s19 = smov %s2271_s2 }
 0x698   :  { %1045 = vsyncpa [#allocation7], 1 }
 0x699   :  { %1047 = vsyncpa [#allocation7 + $0x1], 1 }
 0x69a   :  { %1048 = vsyncpa [#allocation10], 1 }
 0x69b   :  { %1050 = vsyncpa [#allocation10 + $0x1], 1 }
 0x69c   :  { %1051 = vsyncpa [#allocation13], 1 }
 0x69d   :  { %1052 = vsyncpa [#allocation16], 1 }
 0x69e   :  { %1053 = vsyncpa [#allocation19], 1 }
 0x69f   :  { %1054 = vsyncpa [#allocation8], 1 }
 0x6a0   :  { %1056 = vsyncpa [#allocation8 + $0x1], 1 }

</bundles_post_ra>
